<compile_context>
chip_gen: v6e
topology: v6e:2x2x1
jax: 0.10.0
libtpu: 0.0.40
codegen_flags: <defaults>
</compile_context>

<pallas_src>
import functools

import jax
import jax.numpy as jnp
from jax.experimental import pallas as pl
from jax.experimental.pallas import tpu as pltpu


# ------------------------------ small helpers -------------------------------

def _pad_to(a, axis, mult):
    """Zero-pad `a` along `axis` up to a multiple of `mult` (no-op if aligned)."""
    size = a.shape[axis]
    rem = (-size) % mult
    if rem == 0:
        return a
    pads = [(0, 0)] * a.ndim
    pads[axis] = (0, rem)
    return jnp.pad(a, pads)


def _round_up(x, mult):
    return ((x + mult - 1) // mult) * mult


def _layernorm_f32(r, gamma, beta, eps):
    """LayerNorm over the last dim; r must be f32.  Biased var (PyTorch)."""
    mean = jnp.mean(r, axis=-1, keepdims=True)
    rc = r - mean
    var = jnp.mean(rc * rc, axis=-1, keepdims=True)
    inv = jax.lax.rsqrt(var + eps)
    return rc * inv * gamma + beta


# ------------------------- tiled linear (vocab proj) -------------------------

def _matmul_bias_kernel(x_ref, w_ref, b_ref, o_ref, acc_ref):
    @pl.when(pl.program_id(2) == 0)
    def _():
        acc_ref[...] = jnp.zeros_like(acc_ref)

    acc_ref[...] += jnp.dot(x_ref[...], w_ref[...],
                            preferred_element_type=jnp.float32)

    @pl.when(pl.program_id(2) == pl.num_programs(2) - 1)
    def _():
        o_ref[...] = (acc_ref[...] + b_ref[...]).astype(o_ref.dtype)


def linear(x2d, w, b, *, bm=512, bn=512, bk=512):
    """x2d: (M, K) f32, w: (K, N) bf16 (in,out layout), b: (N,) f32 -> (M, N) f32."""
    M, K = x2d.shape
    N = w.shape[1]
    xb = x2d.astype(jnp.bfloat16)
    wb = w.astype(jnp.bfloat16)
    tm = M if M <= bm else bm
    tk = K if K <= bk else bk
    # Lane-dense output: pad the vocab axis to a multiple of 128 before tiling
    # so output stores are unmasked vst (biggest single lever per review).
    n128 = _round_up(N, 128)
    tn = n128 if n128 <= bn else bn
    xp = _pad_to(_pad_to(xb, 0, tm), 1, tk)
    wp = _pad_to(_pad_to(wb, 0, tk), 1, tn)
    bp = _pad_to(b.reshape(1, N).astype(jnp.float32), 1, tn)
    Mp, Kp = xp.shape
    Np = wp.shape[1]
    out = pl.pallas_call(
        _matmul_bias_kernel,
        out_shape=jax.ShapeDtypeStruct((Mp, Np), jnp.float32),
        grid=(Mp // tm, Np // tn, Kp // tk),
        in_specs=[pl.BlockSpec((tm, tk), lambda i, j, k: (i, k)),
                  pl.BlockSpec((tk, tn), lambda i, j, k: (k, j)),
                  pl.BlockSpec((1, tn), lambda i, j, k: (0, j))],
        out_specs=pl.BlockSpec((tm, tn), lambda i, j, k: (i, j)),
        scratch_shapes=[pltpu.VMEM((tm, tn), jnp.float32)],
        compiler_params=pltpu.CompilerParams(
            dimension_semantics=("parallel", "parallel", "arbitrary")),
    )(xp, wp, bp)
    if (Mp, Np) != (M, N):
        out = out[:M, :N]
    return out


# --------------- fused FFN + residual + LayerNorm (dff-tiled) ----------------

def _ffn_ln_kernel(x_ref, w1_ref, b1_ref, w2_ref, b2_ref, g_ref, beta_ref,
                   *rest, eps, has_final):
    if has_final:
        fg_ref, fb_ref, o_ref, acc_ref = rest
    else:
        o_ref, acc_ref = rest

    j = pl.program_id(1)

    @pl.when(j == 0)
    def _():
        acc_ref[...] = jnp.zeros_like(acc_ref)

    x = x_ref[...]                                               # (tm, E) f32
    xb = x.astype(jnp.bfloat16)
    # (tm, tdff) chunk of the ReLU intermediate -- never materialized whole.
    h = jnp.dot(xb, w1_ref[...], preferred_element_type=jnp.float32) + b1_ref[...]
    h = jnp.maximum(h, 0.0)
    acc_ref[...] += jnp.dot(h.astype(jnp.bfloat16), w2_ref[...],
                            preferred_element_type=jnp.float32)

    @pl.when(j == pl.num_programs(1) - 1)
    def _():
        r = x.astype(jnp.float32) + acc_ref[...] + b2_ref[...]   # post-norm resid
        y = _layernorm_f32(r, g_ref[...], beta_ref[...], eps)
        if has_final:                                            # fused stack-final LN
            y = _layernorm_f32(y, fg_ref[...], fb_ref[...], eps)
        o_ref[...] = y.astype(o_ref.dtype)


def ffn_add_layernorm(x2d, w1, b1, w2, b2, gamma, beta, final_g=None,
                      final_b=None, eps=1e-5, row_tile=256, dff_tile=512):
    """LayerNorm(x + ReLU(x@W1+b1)@W2 + b2), optionally followed by a second
    (stack-final) LayerNorm.  The dff axis is a pipelined reduction grid axis."""
    M, E = x2d.shape
    dff = w1.shape[1]
    tm = M if M <= row_tile else row_tile
    tdff = dff if dff <= dff_tile else dff_tile
    xp = _pad_to(x2d, 0, tm)
    w1p = _pad_to(w1, 1, tdff)
    b1p = _pad_to(b1.reshape(1, dff).astype(jnp.float32), 1, tdff)
    w2p = _pad_to(w2, 0, tdff)
    Mp = xp.shape[0]
    dffp = w1p.shape[1]
    has_final = final_g is not None

    args = [xp, w1p, b1p, w2p, b2.reshape(1, E), gamma.reshape(1, E),
            beta.reshape(1, E)]
    in_specs = [pl.BlockSpec((tm, E), lambda i, j: (i, 0)),
                pl.BlockSpec((E, tdff), lambda i, j: (0, j)),
                pl.BlockSpec((1, tdff), lambda i, j: (0, j)),
                pl.BlockSpec((tdff, E), lambda i, j: (j, 0)),
                pl.BlockSpec((1, E), lambda i, j: (0, 0)),
                pl.BlockSpec((1, E), lambda i, j: (0, 0)),
                pl.BlockSpec((1, E), lambda i, j: (0, 0))]
    if has_final:
        args += [final_g.reshape(1, E), final_b.reshape(1, E)]
        in_specs += [pl.BlockSpec((1, E), lambda i, j: (0, 0)),
                     pl.BlockSpec((1, E), lambda i, j: (0, 0))]

    out = pl.pallas_call(
        functools.partial(_ffn_ln_kernel, eps=eps, has_final=has_final),
        out_shape=jax.ShapeDtypeStruct((Mp, E), x2d.dtype),
        grid=(Mp // tm, dffp // tdff),
        in_specs=in_specs,
        out_specs=pl.BlockSpec((tm, E), lambda i, j: (i, 0)),
        scratch_shapes=[pltpu.VMEM((tm, E), jnp.float32)],
        compiler_params=pltpu.CompilerParams(
            dimension_semantics=("parallel", "arbitrary")),
    )(*args)
    return out[:M] if Mp != M else out


# -------------- fused multi-head attention + residual + LayerNorm ------------

def _attn_out_ln(xq, q, k, v, wo_ref, bo, gamma, beta, mask, ocat_ref,
                 num_heads, scale, eps):
    """Per-head attention into a (Sq, E) VMEM scratch, then ONE full-K output
    projection, residual add and LayerNorm.  No tiny K=Dh matmuls."""
    Sq, E = q.shape
    Dh = E // num_heads
    for h in range(num_heads):                       # static unroll over heads
        lo = h * Dh
        qh = (q[:, lo:lo + Dh] * scale).astype(jnp.bfloat16)
        kh = k[:, lo:lo + Dh].astype(jnp.bfloat16)
        vh = v[:, lo:lo + Dh].astype(jnp.bfloat16)
        # scores: contract on the head dim of both operands (no explicit k.T).
        s = jax.lax.dot_general(qh, kh, (((1,), (1,)), ((), ())),
                                preferred_element_type=jnp.float32)
        if mask is not None:
            s = s + mask
        m = jnp.max(s, axis=-1, keepdims=True)
        p = jnp.exp(s - m)
        denom = jnp.sum(p, axis=-1, keepdims=True)
        p = p * pl.reciprocal(denom, approx=True)    # EUP slot, frees VALU
        oh = jnp.dot(p.astype(jnp.bfloat16), vh,
                     preferred_element_type=jnp.float32)          # (Sq, Dh) f32
        ocat_ref[:, lo:lo + Dh] = oh                  # lane-offset store, no matmul
    # Single full-K output projection: (Sq, E) @ (E, E).
    proj = jnp.dot(ocat_ref[...].astype(jnp.bfloat16), wo_ref[...],
                   preferred_element_type=jnp.float32)
    r = xq.astype(jnp.float32) + proj + bo            # post-norm residual
    return _layernorm_f32(r, gamma, beta, eps)


def _self_attn_ln_kernel(x_ref, wqkv_ref, bqkv_ref, wo_ref, bo_ref,
                         g_ref, beta_ref, *rest, num_heads, scale, eps, has_mask):
    if has_mask:
        mask_ref, o_ref, ocat_ref = rest
        mask = mask_ref[...].astype(jnp.float32)
    else:
        o_ref, ocat_ref = rest
        mask = None
    x = x_ref[...]                                                # (S, E) f32
    E = x.shape[-1]
    qkv = jnp.dot(x.astype(jnp.bfloat16), wqkv_ref[...],          # one (E,3E) matmul
                  preferred_element_type=jnp.float32) + bqkv_ref[...]
    q, k, v = qkv[:, :E], qkv[:, E:2 * E], qkv[:, 2 * E:]
    y = _attn_out_ln(x, q, k, v, wo_ref, bo_ref[...], g_ref[...], beta_ref[...],
                     mask, ocat_ref, num_heads, scale, eps)
    o_ref[...] = y.astype(o_ref.dtype)


def _cross_attn_ln_kernel(xq_ref, xkv_ref, wq_ref, bq_ref, wkv_ref, bkv_ref,
                          wo_ref, bo_ref, g_ref, beta_ref, *rest,
                          num_heads, scale, eps, has_mask):
    if has_mask:
        mask_ref, o_ref, ocat_ref = rest
        mask = mask_ref[...].astype(jnp.float32)
    else:
        o_ref, ocat_ref = rest
        mask = None
    xq = xq_ref[...]                                              # (Sq, E) f32
    xkv = xkv_ref[...]                                            # (Skv, E) f32
    E = xq.shape[-1]
    q = jnp.dot(xq.astype(jnp.bfloat16), wq_ref[...],
                preferred_element_type=jnp.float32) + bq_ref[...]
    kv = jnp.dot(xkv.astype(jnp.bfloat16), wkv_ref[...],
                 preferred_element_type=jnp.float32) + bkv_ref[...]
    k, v = kv[:, :E], kv[:, E:]
    y = _attn_out_ln(xq, q, k, v, wo_ref, bo_ref[...], g_ref[...], beta_ref[...],
                     mask, ocat_ref, num_heads, scale, eps)
    o_ref[...] = y.astype(o_ref.dtype)


def self_attn_add_ln(x, p, ln_g, ln_b, num_heads, attn_mask=None, eps=1e-5):
    """x: (B, S, E) -> LayerNorm(x + MHA(x, x)) : (B, S, E)."""
    B, S, E = x.shape
    Dh = E // num_heads
    scale = 1.0 / float(Dh) ** 0.5
    has_mask = attn_mask is not None
    args = [x, p["wqkv"], p["bqkv"].reshape(1, 3 * E), p["wo"],
            p["bo"].reshape(1, E), ln_g.reshape(1, E), ln_b.reshape(1, E)]
    in_specs = [pl.BlockSpec((pl.Squeezed(), S, E), lambda b: (b, 0, 0)),
                pl.BlockSpec((E, 3 * E), lambda b: (0, 0)),
                pl.BlockSpec((1, 3 * E), lambda b: (0, 0)),
                pl.BlockSpec((E, E), lambda b: (0, 0)),
                pl.BlockSpec((1, E), lambda b: (0, 0)),
                pl.BlockSpec((1, E), lambda b: (0, 0)),
                pl.BlockSpec((1, E), lambda b: (0, 0))]
    if has_mask:
        args.append(attn_mask.astype(jnp.bfloat16))   # half the mask DMA bytes
        in_specs.append(pl.BlockSpec((S, S), lambda b: (0, 0)))
    return pl.pallas_call(
        functools.partial(_self_attn_ln_kernel, num_heads=num_heads,
                          scale=scale, eps=eps, has_mask=has_mask),
        out_shape=jax.ShapeDtypeStruct((B, S, E), x.dtype),
        grid=(B,),
        in_specs=in_specs,
        out_specs=pl.BlockSpec((pl.Squeezed(), S, E), lambda b: (b, 0, 0)),
        scratch_shapes=[pltpu.VMEM((S, E), jnp.float32)],
        compiler_params=pltpu.CompilerParams(dimension_semantics=("parallel",)),
    )(*args)


def cross_attn_add_ln(xq, xkv, p, ln_g, ln_b, num_heads, attn_mask=None, eps=1e-5):
    """xq: (B, Sq, E), xkv: (B, Skv, E) -> LayerNorm(xq + MHA(xq, xkv))."""
    B, Sq, E = xq.shape
    Skv = xkv.shape[1]
    Dh = E // num_heads
    scale = 1.0 / float(Dh) ** 0.5
    has_mask = attn_mask is not None
    args = [xq, xkv, p["wq"], p["bq"].reshape(1, E), p["wkv"],
            p["bkv"].reshape(1, 2 * E), p["wo"], p["bo"].reshape(1, E),
            ln_g.reshape(1, E), ln_b.reshape(1, E)]
    in_specs = [pl.BlockSpec((pl.Squeezed(), Sq, E), lambda b: (b, 0, 0)),
                pl.BlockSpec((pl.Squeezed(), Skv, E), lambda b: (b, 0, 0)),
                pl.BlockSpec((E, E), lambda b: (0, 0)),
                pl.BlockSpec((1, E), lambda b: (0, 0)),
                pl.BlockSpec((E, 2 * E), lambda b: (0, 0)),
                pl.BlockSpec((1, 2 * E), lambda b: (0, 0)),
                pl.BlockSpec((E, E), lambda b: (0, 0)),
                pl.BlockSpec((1, E), lambda b: (0, 0)),
                pl.BlockSpec((1, E), lambda b: (0, 0)),
                pl.BlockSpec((1, E), lambda b: (0, 0))]
    if has_mask:
        args.append(attn_mask.astype(jnp.bfloat16))
        in_specs.append(pl.BlockSpec((Sq, Skv), lambda b: (0, 0)))
    return pl.pallas_call(
        functools.partial(_cross_attn_ln_kernel, num_heads=num_heads,
                          scale=scale, eps=eps, has_mask=has_mask),
        out_shape=jax.ShapeDtypeStruct((B, Sq, E), xq.dtype),
        grid=(B,),
        in_specs=in_specs,
        out_specs=pl.BlockSpec((pl.Squeezed(), Sq, E), lambda b: (b, 0, 0)),
        scratch_shapes=[pltpu.VMEM((Sq, E), jnp.float32)],
        compiler_params=pltpu.CompilerParams(dimension_semantics=("parallel",)),
    )(*args)


# ------------------------- transformer building blocks ----------------------

def encoder_layer(x, p, num_heads, src_mask=None, final_ln=None):
    B, S, E = x.shape
    x = self_attn_add_ln(x, p["self_attn"], p["ln1_g"], p["ln1_b"],
                         num_heads, src_mask)
    fg, fb = final_ln if final_ln is not None else (None, None)
    x = ffn_add_layernorm(x.reshape(B * S, E), p["w1"], p["b1"], p["w2"], p["b2"],
                          p["ln2_g"], p["ln2_b"], final_g=fg, final_b=fb
                          ).reshape(B, S, E)
    return x


def decoder_layer(y, memory, p, num_heads, tgt_mask=None, mem_mask=None,
                  final_ln=None):
    B, S, E = y.shape
    y = self_attn_add_ln(y, p["self_attn"], p["ln1_g"], p["ln1_b"],
                         num_heads, tgt_mask)
    y = cross_attn_add_ln(y, memory, p["cross_attn"], p["ln2_g"], p["ln2_b"],
                          num_heads, mem_mask)
    fg, fb = final_ln if final_ln is not None else (None, None)
    y = ffn_add_layernorm(y.reshape(B * S, E), p["w1"], p["b1"], p["w2"], p["b2"],
                          p["ln3_g"], p["ln3_b"], final_g=fg, final_b=fb
                          ).reshape(B, S, E)
    return y


def music_transformer_forward(params, src, tgt, num_heads,
                              src_mask=None, tgt_mask=None):
    """src, tgt: (B, S) int32 token ids -> (B, S_tgt, vocab) logits."""
    # TODO(synk): src/tgt key-padding masks are not implemented (the reference
    # forward is exercised with None for them).
    E = params["embedding"].shape[1]
    B, Ssrc = src.shape
    Stgt = tgt.shape[1]
    vocab = params["fc_w"].shape[1]

    # Embedding gather + learned positional encoding (XLA glue, not hot path).
    x = params["embedding"][src] + params["pos"][:Ssrc, :]        # (B, Ssrc, E)
    y = params["embedding"][tgt] + params["pos"][:Stgt, :]        # (B, Stgt, E)
    # Stay batch-major (B, S, E): equivalent to nn.Transformer's (S, B, E)
    # layout since batch elements are independent; avoids relayout transposes.

    n_enc = len(params["enc_layers"])
    for li, lp in enumerate(params["enc_layers"]):
        final_ln = ((params["enc_norm_g"], params["enc_norm_b"])
                    if li == n_enc - 1 else None)       # fuse stack-final LN
        x = encoder_layer(x, lp, num_heads, src_mask, final_ln=final_ln)
    memory = x

    n_dec = len(params["dec_layers"])
    for li, lp in enumerate(params["dec_layers"]):
        final_ln = ((params["dec_norm_g"], params["dec_norm_b"])
                    if li == n_dec - 1 else None)
        y = decoder_layer(y, memory, lp, num_heads, tgt_mask, None,
                          final_ln=final_ln)

    logits = linear(y.reshape(B * Stgt, E), params["fc_w"], params["fc_b"])
    return logits.reshape(B, Stgt, vocab)


# ------------------------------ parameter init ------------------------------

def _dense(key, shape, scale=0.05):
    return (scale * jax.random.normal(key, shape)).astype(jnp.float32)


def _mxu_w(key, shape, scale=0.05):
    """Matmul weights are stored in bf16 (cast once): half the HBM/VMEM bytes."""
    return _dense(key, shape, scale).astype(jnp.bfloat16)


def _init_self_attn(key, E):
    ks = jax.random.split(key, 4)
    return {"wqkv": _mxu_w(ks[0], (E, 3 * E)), "bqkv": _dense(ks[1], (3 * E,)),
            "wo": _mxu_w(ks[2], (E, E)), "bo": _dense(ks[3], (E,))}


def _init_cross_attn(key, E):
    ks = jax.random.split(key, 6)
    return {"wq": _mxu_w(ks[0], (E, E)), "bq": _dense(ks[1], (E,)),
            "wkv": _mxu_w(ks[2], (E, 2 * E)), "bkv": _dense(ks[3], (2 * E,)),
            "wo": _mxu_w(ks[4], (E, E)), "bo": _dense(ks[5], (E,))}


def _init_ffn(key, E, dff):
    ks = jax.random.split(key, 4)
    return {"w1": _mxu_w(ks[0], (E, dff)), "b1": _dense(ks[1], (dff,)),
            "w2": _mxu_w(ks[2], (dff, E)), "b2": _dense(ks[3], (E,))}


def init_params(key, vocab_size, embed_dim, num_layers, max_len, dff, pad_token):
    E = embed_dim
    keys = jax.random.split(key, 4 + 2 * num_layers)
    emb = _dense(keys[0], (vocab_size, E))
    emb = emb.at[pad_token].set(0.0)                  # padding_idx row is zero
    params = {
        "embedding": emb,
        "pos": _dense(keys[1], (max_len, E)),         # learnable PE (nn.Parameter)
        "enc_norm_g": jnp.ones((E,), jnp.float32),
        "enc_norm_b": jnp.zeros((E,), jnp.float32),
        "dec_norm_g": jnp.ones((E,), jnp.float32),
        "dec_norm_b": jnp.zeros((E,), jnp.float32),
        "fc_w": _mxu_w(keys[2], (E, vocab_size)),
        "fc_b": _dense(keys[3], (vocab_size,)),
        "enc_layers": [],
        "dec_layers": [],
    }
    for l in range(num_layers):
        ek = jax.random.split(keys[4 + l], 2)
        lp = {"self_attn": _init_self_attn(ek[0], E),
              "ln1_g": jnp.ones((E,), jnp.float32), "ln1_b": jnp.zeros((E,), jnp.float32),
              "ln2_g": jnp.ones((E,), jnp.float32), "ln2_b": jnp.zeros((E,), jnp.float32)}
        lp.update(_init_ffn(ek[1], E, dff))
        params["enc_layers"].append(lp)
    for l in range(num_layers):
        dk = jax.random.split(keys[4 + num_layers + l], 3)
        lp = {"self_attn": _init_self_attn(dk[0], E),
              "cross_attn": _init_cross_attn(dk[1], E),
              "ln1_g": jnp.ones((E,), jnp.float32), "ln1_b": jnp.zeros((E,), jnp.float32),
              "ln2_g": jnp.ones((E,), jnp.float32), "ln2_b": jnp.zeros((E,), jnp.float32),
              "ln3_g": jnp.ones((E,), jnp.float32), "ln3_b": jnp.zeros((E,), jnp.float32)}
        lp.update(_init_ffn(dk[2], E, dff))
        params["dec_layers"].append(lp)
    return params


# ----------------------------------- main -----------------------------------

if __name__ == "__main__":
    vocab_size = 64
    embed_dim = 32
    num_heads = 4
    num_layers = 2
    max_len = 16
    pad_token = 0
    dff = 64
    B, S_src, S_tgt = 2, 8, 8

    key = jax.random.PRNGKey(0)
    pkey, skey, tkey = jax.random.split(key, 3)
    params = init_params(pkey, vocab_size, embed_dim, num_layers, max_len, dff,
                         pad_token)

    src = jax.random.randint(skey, (B, S_src), 1, vocab_size, dtype=jnp.int32)
    tgt = jax.random.randint(tkey, (B, S_tgt), 1, vocab_size, dtype=jnp.int32)

    fwd = jax.jit(functools.partial(music_transformer_forward, num_heads=num_heads))
    logits = jax.block_until_ready(fwd(params, src, tgt))
    assert logits.shape == (B, S_tgt, vocab_size)
    assert bool(jnp.all(jnp.isfinite(logits)))
    print("KERNEL_OK")
</pallas_src>

<mosaic_0001>
module attributes {stable_mosaic.version = 11 : i64} {
  func.func @_self_attn_ln_kernel(%arg0: i32, %arg1: memref<1x8x32xf32, #tpu.memory_space<vmem>>, %arg2: memref<32x96xbf16, #tpu.memory_space<vmem>>, %arg3: memref<1x96xf32, #tpu.memory_space<vmem>>, %arg4: memref<32x32xbf16, #tpu.memory_space<vmem>>, %arg5: memref<1x32xf32, #tpu.memory_space<vmem>>, %arg6: memref<1x32xf32, #tpu.memory_space<vmem>>, %arg7: memref<1x32xf32, #tpu.memory_space<vmem>>, %arg8: memref<1x8x32xf32, #tpu.memory_space<vmem>>, %arg9: memref<8x32xf32, #tpu.memory_space<vmem>>) attributes {dimension_semantics = [#tpu.dimension_semantics<parallel>], iteration_bounds = array<i64: 2>, scalar_prefetch = 0 : i64, scratch_operands = 1 : i64, tpu.core_type = #tpu.core_type<tc>, window_params = [{transform_indices = @transform_0, window_bounds = array<i64: 1, 8, 32>}, {pipeline_mode = #tpu.pipeline_mode<synchronous>, transform_indices = @transform_1, window_bounds = array<i64: 32, 96>}, {pipeline_mode = #tpu.pipeline_mode<synchronous>, transform_indices = @transform_2, window_bounds = array<i64: 1, 96>}, {pipeline_mode = #tpu.pipeline_mode<synchronous>, transform_indices = @transform_3, window_bounds = array<i64: 32, 32>}, {pipeline_mode = #tpu.pipeline_mode<synchronous>, transform_indices = @transform_4, window_bounds = array<i64: 1, 32>}, {pipeline_mode = #tpu.pipeline_mode<synchronous>, transform_indices = @transform_5, window_bounds = array<i64: 1, 32>}, {pipeline_mode = #tpu.pipeline_mode<synchronous>, transform_indices = @transform_6, window_bounds = array<i64: 1, 32>}, {transform_indices = @transform_7, window_bounds = array<i64: 1, 8, 32>}]} {
    %c0 = arith.constant 0 : index
    %c0_0 = arith.constant 0 : index
    %c0_1 = arith.constant 0 : index
    %0 = vector.load %arg1[%c0, %c0_0, %c0_1] : memref<1x8x32xf32, #tpu.memory_space<vmem>>, vector<1x8x32xf32>
    %1 = vector.shape_cast %0 : vector<1x8x32xf32> to vector<8x32xf32>
    %2 = arith.truncf %1 : vector<8x32xf32> to vector<8x32xbf16>
    %c0_2 = arith.constant 0 : index
    %c0_3 = arith.constant 0 : index
    %3 = vector.load %arg2[%c0_2, %c0_3] : memref<32x96xbf16, #tpu.memory_space<vmem>>, vector<32x96xbf16>
    %cst = arith.constant dense<0.000000e+00> : vector<8x96xf32>
    %4 = tpu.matmul %2, %3, %cst {dimension_numbers = #tpu.dot_dimension_numbers<[1], [0], [0], [1], [0, 0, 1, 1], [], []>} : vector<8x32xbf16>, vector<32x96xbf16>, vector<8x96xf32> -> vector<8x96xf32>
    %c0_4 = arith.constant 0 : index
    %c0_5 = arith.constant 0 : index
    %5 = vector.load %arg3[%c0_4, %c0_5] : memref<1x96xf32, #tpu.memory_space<vmem>>, vector<1x96xf32>
    %6 = vector.broadcast %5 : vector<1x96xf32> to vector<8x96xf32>
    %7 = arith.addf %4, %6 : vector<8x96xf32>
    %8 = vector.extract_strided_slice %7 {offsets = [0, 0], sizes = [8, 32], strides = [1, 1]} : vector<8x96xf32> to vector<8x32xf32>
    %9 = vector.extract_strided_slice %7 {offsets = [0, 32], sizes = [8, 32], strides = [1, 1]} : vector<8x96xf32> to vector<8x32xf32>
    %10 = vector.extract_strided_slice %7 {offsets = [0, 64], sizes = [8, 32], strides = [1, 1]} : vector<8x96xf32> to vector<8x32xf32>
    %c0_6 = arith.constant 0 : index
    %c0_7 = arith.constant 0 : index
    %11 = vector.load %arg5[%c0_6, %c0_7] : memref<1x32xf32, #tpu.memory_space<vmem>>, vector<1x32xf32>
    %c0_8 = arith.constant 0 : index
    %c0_9 = arith.constant 0 : index
    %12 = vector.load %arg6[%c0_8, %c0_9] : memref<1x32xf32, #tpu.memory_space<vmem>>, vector<1x32xf32>
    %c0_10 = arith.constant 0 : index
    %c0_11 = arith.constant 0 : index
    %13 = vector.load %arg7[%c0_10, %c0_11] : memref<1x32xf32, #tpu.memory_space<vmem>>, vector<1x32xf32>
    %14 = vector.extract_strided_slice %8 {offsets = [0, 0], sizes = [8, 8], strides = [1, 1]} : vector<8x32xf32> to vector<8x8xf32>
    %cst_12 = arith.constant 0.353553385 : f32
    %15 = vector.broadcast %cst_12 : f32 to vector<8x8xf32>
    %16 = arith.mulf %14, %15 : vector<8x8xf32>
    %17 = arith.truncf %16 : vector<8x8xf32> to vector<8x8xbf16>
    %18 = vector.extract_strided_slice %9 {offsets = [0, 0], sizes = [8, 8], strides = [1, 1]} : vector<8x32xf32> to vector<8x8xf32>
    %19 = arith.truncf %18 : vector<8x8xf32> to vector<8x8xbf16>
    %20 = vector.extract_strided_slice %10 {offsets = [0, 0], sizes = [8, 8], strides = [1, 1]} : vector<8x32xf32> to vector<8x8xf32>
    %21 = arith.truncf %20 : vector<8x8xf32> to vector<8x8xbf16>
    %cst_13 = arith.constant dense<0.000000e+00> : vector<8x8xf32>
    %22 = tpu.matmul %17, %19, %cst_13 {dimension_numbers = #tpu.dot_dimension_numbers<[1], [1], [0], [0], [0, 0, 1, 0], [], []>} : vector<8x8xbf16>, vector<8x8xbf16>, vector<8x8xf32> -> vector<8x8xf32>
    %cst_14 = arith.constant dense<0xFF800000> : vector<8xf32>
    %23 = vector.multi_reduction <maximumf>, %22, %cst_14 [1] : vector<8x8xf32> to vector<8xf32>
    %24 = vector.shape_cast %23 : vector<8xf32> to vector<8x1xf32>
    %25 = vector.broadcast %24 : vector<8x1xf32> to vector<8x8xf32>
    %26 = arith.subf %22, %25 : vector<8x8xf32>
    %27 = math.exp %26 : vector<8x8xf32>
    %cst_15 = arith.constant dense<0.000000e+00> : vector<8xf32>
    %28 = vector.multi_reduction <add>, %27, %cst_15 [1] : vector<8x8xf32> to vector<8xf32>
    %29 = vector.shape_cast %28 : vector<8xf32> to vector<8x1xf32>
    %30 = tpu.reciprocal %29 {approx = true} : vector<8x1xf32> -> vector<8x1xf32>
    %31 = vector.broadcast %30 : vector<8x1xf32> to vector<8x8xf32>
    %32 = arith.mulf %27, %31 : vector<8x8xf32>
    %33 = arith.truncf %32 : vector<8x8xf32> to vector<8x8xbf16>
    %cst_16 = arith.constant dense<0.000000e+00> : vector<8x8xf32>
    %34 = tpu.matmul %33, %21, %cst_16 {dimension_numbers = #tpu.dot_dimension_numbers<[1], [0], [0], [1], [0, 0, 1, 1], [], []>} : vector<8x8xbf16>, vector<8x8xbf16>, vector<8x8xf32> -> vector<8x8xf32>
    %c0_17 = arith.constant 0 : index
    %c0_18 = arith.constant 0 : index
    %35 = vector.load %arg9[%c0_17, %c0_18] : memref<8x32xf32, #tpu.memory_space<vmem>>, vector<8x8xf32>
    tpu.vector_store %arg9[%c0_17, %c0_18], %34 {strides = array<i32>} : memref<8x32xf32, #tpu.memory_space<vmem>>, vector<8x8xf32>,
    %36 = vector.extract_strided_slice %8 {offsets = [0, 8], sizes = [8, 8], strides = [1, 1]} : vector<8x32xf32> to vector<8x8xf32>
    %cst_19 = arith.constant 0.353553385 : f32
    %37 = vector.broadcast %cst_19 : f32 to vector<8x8xf32>
    %38 = arith.mulf %36, %37 : vector<8x8xf32>
    %39 = arith.truncf %38 : vector<8x8xf32> to vector<8x8xbf16>
    %40 = vector.extract_strided_slice %9 {offsets = [0, 8], sizes = [8, 8], strides = [1, 1]} : vector<8x32xf32> to vector<8x8xf32>
    %41 = arith.truncf %40 : vector<8x8xf32> to vector<8x8xbf16>
    %42 = vector.extract_strided_slice %10 {offsets = [0, 8], sizes = [8, 8], strides = [1, 1]} : vector<8x32xf32> to vector<8x8xf32>
    %43 = arith.truncf %42 : vector<8x8xf32> to vector<8x8xbf16>
    %cst_20 = arith.constant dense<0.000000e+00> : vector<8x8xf32>
    %44 = tpu.matmul %39, %41, %cst_20 {dimension_numbers = #tpu.dot_dimension_numbers<[1], [1], [0], [0], [0, 0, 1, 0], [], []>} : vector<8x8xbf16>, vector<8x8xbf16>, vector<8x8xf32> -> vector<8x8xf32>
    %cst_21 = arith.constant dense<0xFF800000> : vector<8xf32>
    %45 = vector.multi_reduction <maximumf>, %44, %cst_21 [1] : vector<8x8xf32> to vector<8xf32>
    %46 = vector.shape_cast %45 : vector<8xf32> to vector<8x1xf32>
    %47 = vector.broadcast %46 : vector<8x1xf32> to vector<8x8xf32>
    %48 = arith.subf %44, %47 : vector<8x8xf32>
    %49 = math.exp %48 : vector<8x8xf32>
    %cst_22 = arith.constant dense<0.000000e+00> : vector<8xf32>
    %50 = vector.multi_reduction <add>, %49, %cst_22 [1] : vector<8x8xf32> to vector<8xf32>
    %51 = vector.shape_cast %50 : vector<8xf32> to vector<8x1xf32>
    %52 = tpu.reciprocal %51 {approx = true} : vector<8x1xf32> -> vector<8x1xf32>
    %53 = vector.broadcast %52 : vector<8x1xf32> to vector<8x8xf32>
    %54 = arith.mulf %49, %53 : vector<8x8xf32>
    %55 = arith.truncf %54 : vector<8x8xf32> to vector<8x8xbf16>
    %cst_23 = arith.constant dense<0.000000e+00> : vector<8x8xf32>
    %56 = tpu.matmul %55, %43, %cst_23 {dimension_numbers = #tpu.dot_dimension_numbers<[1], [0], [0], [1], [0, 0, 1, 1], [], []>} : vector<8x8xbf16>, vector<8x8xbf16>, vector<8x8xf32> -> vector<8x8xf32>
    %c0_24 = arith.constant 0 : index
    %c8 = arith.constant 8 : index
    %57 = vector.load %arg9[%c0_24, %c8] : memref<8x32xf32, #tpu.memory_space<vmem>>, vector<8x8xf32>
    tpu.vector_store %arg9[%c0_24, %c8], %56 {strides = array<i32>} : memref<8x32xf32, #tpu.memory_space<vmem>>, vector<8x8xf32>,
    %58 = vector.extract_strided_slice %8 {offsets = [0, 16], sizes = [8, 8], strides = [1, 1]} : vector<8x32xf32> to vector<8x8xf32>
    %cst_25 = arith.constant 0.353553385 : f32
    %59 = vector.broadcast %cst_25 : f32 to vector<8x8xf32>
    %60 = arith.mulf %58, %59 : vector<8x8xf32>
    %61 = arith.truncf %60 : vector<8x8xf32> to vector<8x8xbf16>
    %62 = vector.extract_strided_slice %9 {offsets = [0, 16], sizes = [8, 8], strides = [1, 1]} : vector<8x32xf32> to vector<8x8xf32>
    %63 = arith.truncf %62 : vector<8x8xf32> to vector<8x8xbf16>
    %64 = vector.extract_strided_slice %10 {offsets = [0, 16], sizes = [8, 8], strides = [1, 1]} : vector<8x32xf32> to vector<8x8xf32>
    %65 = arith.truncf %64 : vector<8x8xf32> to vector<8x8xbf16>
    %cst_26 = arith.constant dense<0.000000e+00> : vector<8x8xf32>
    %66 = tpu.matmul %61, %63, %cst_26 {dimension_numbers = #tpu.dot_dimension_numbers<[1], [1], [0], [0], [0, 0, 1, 0], [], []>} : vector<8x8xbf16>, vector<8x8xbf16>, vector<8x8xf32> -> vector<8x8xf32>
    %cst_27 = arith.constant dense<0xFF800000> : vector<8xf32>
    %67 = vector.multi_reduction <maximumf>, %66, %cst_27 [1] : vector<8x8xf32> to vector<8xf32>
    %68 = vector.shape_cast %67 : vector<8xf32> to vector<8x1xf32>
    %69 = vector.broadcast %68 : vector<8x1xf32> to vector<8x8xf32>
    %70 = arith.subf %66, %69 : vector<8x8xf32>
    %71 = math.exp %70 : vector<8x8xf32>
    %cst_28 = arith.constant dense<0.000000e+00> : vector<8xf32>
    %72 = vector.multi_reduction <add>, %71, %cst_28 [1] : vector<8x8xf32> to vector<8xf32>
    %73 = vector.shape_cast %72 : vector<8xf32> to vector<8x1xf32>
    %74 = tpu.reciprocal %73 {approx = true} : vector<8x1xf32> -> vector<8x1xf32>
    %75 = vector.broadcast %74 : vector<8x1xf32> to vector<8x8xf32>
    %76 = arith.mulf %71, %75 : vector<8x8xf32>
    %77 = arith.truncf %76 : vector<8x8xf32> to vector<8x8xbf16>
    %cst_29 = arith.constant dense<0.000000e+00> : vector<8x8xf32>
    %78 = tpu.matmul %77, %65, %cst_29 {dimension_numbers = #tpu.dot_dimension_numbers<[1], [0], [0], [1], [0, 0, 1, 1], [], []>} : vector<8x8xbf16>, vector<8x8xbf16>, vector<8x8xf32> -> vector<8x8xf32>
    %c0_30 = arith.constant 0 : index
    %c16 = arith.constant 16 : index
    %79 = vector.load %arg9[%c0_30, %c16] : memref<8x32xf32, #tpu.memory_space<vmem>>, vector<8x8xf32>
    tpu.vector_store %arg9[%c0_30, %c16], %78 {strides = array<i32>} : memref<8x32xf32, #tpu.memory_space<vmem>>, vector<8x8xf32>,
    %80 = vector.extract_strided_slice %8 {offsets = [0, 24], sizes = [8, 8], strides = [1, 1]} : vector<8x32xf32> to vector<8x8xf32>
    %cst_31 = arith.constant 0.353553385 : f32
    %81 = vector.broadcast %cst_31 : f32 to vector<8x8xf32>
    %82 = arith.mulf %80, %81 : vector<8x8xf32>
    %83 = arith.truncf %82 : vector<8x8xf32> to vector<8x8xbf16>
    %84 = vector.extract_strided_slice %9 {offsets = [0, 24], sizes = [8, 8], strides = [1, 1]} : vector<8x32xf32> to vector<8x8xf32>
    %85 = arith.truncf %84 : vector<8x8xf32> to vector<8x8xbf16>
    %86 = vector.extract_strided_slice %10 {offsets = [0, 24], sizes = [8, 8], strides = [1, 1]} : vector<8x32xf32> to vector<8x8xf32>
    %87 = arith.truncf %86 : vector<8x8xf32> to vector<8x8xbf16>
    %cst_32 = arith.constant dense<0.000000e+00> : vector<8x8xf32>
    %88 = tpu.matmul %83, %85, %cst_32 {dimension_numbers = #tpu.dot_dimension_numbers<[1], [1], [0], [0], [0, 0, 1, 0], [], []>} : vector<8x8xbf16>, vector<8x8xbf16>, vector<8x8xf32> -> vector<8x8xf32>
    %cst_33 = arith.constant dense<0xFF800000> : vector<8xf32>
    %89 = vector.multi_reduction <maximumf>, %88, %cst_33 [1] : vector<8x8xf32> to vector<8xf32>
    %90 = vector.shape_cast %89 : vector<8xf32> to vector<8x1xf32>
    %91 = vector.broadcast %90 : vector<8x1xf32> to vector<8x8xf32>
    %92 = arith.subf %88, %91 : vector<8x8xf32>
    %93 = math.exp %92 : vector<8x8xf32>
    %cst_34 = arith.constant dense<0.000000e+00> : vector<8xf32>
    %94 = vector.multi_reduction <add>, %93, %cst_34 [1] : vector<8x8xf32> to vector<8xf32>
    %95 = vector.shape_cast %94 : vector<8xf32> to vector<8x1xf32>
    %96 = tpu.reciprocal %95 {approx = true} : vector<8x1xf32> -> vector<8x1xf32>
    %97 = vector.broadcast %96 : vector<8x1xf32> to vector<8x8xf32>
    %98 = arith.mulf %93, %97 : vector<8x8xf32>
    %99 = arith.truncf %98 : vector<8x8xf32> to vector<8x8xbf16>
    %cst_35 = arith.constant dense<0.000000e+00> : vector<8x8xf32>
    %100 = tpu.matmul %99, %87, %cst_35 {dimension_numbers = #tpu.dot_dimension_numbers<[1], [0], [0], [1], [0, 0, 1, 1], [], []>} : vector<8x8xbf16>, vector<8x8xbf16>, vector<8x8xf32> -> vector<8x8xf32>
    %c0_36 = arith.constant 0 : index
    %c24 = arith.constant 24 : index
    %101 = vector.load %arg9[%c0_36, %c24] : memref<8x32xf32, #tpu.memory_space<vmem>>, vector<8x8xf32>
    tpu.vector_store %arg9[%c0_36, %c24], %100 {strides = array<i32>} : memref<8x32xf32, #tpu.memory_space<vmem>>, vector<8x8xf32>,
    %c0_37 = arith.constant 0 : index
    %c0_38 = arith.constant 0 : index
    %102 = vector.load %arg9[%c0_37, %c0_38] : memref<8x32xf32, #tpu.memory_space<vmem>>, vector<8x32xf32>
    %103 = arith.truncf %102 : vector<8x32xf32> to vector<8x32xbf16>
    %c0_39 = arith.constant 0 : index
    %c0_40 = arith.constant 0 : index
    %104 = vector.load %arg4[%c0_39, %c0_40] : memref<32x32xbf16, #tpu.memory_space<vmem>>, vector<32x32xbf16>
    %cst_41 = arith.constant dense<0.000000e+00> : vector<8x32xf32>
    %105 = tpu.matmul %103, %104, %cst_41 {dimension_numbers = #tpu.dot_dimension_numbers<[1], [0], [0], [1], [0, 0, 1, 1], [], []>} : vector<8x32xbf16>, vector<32x32xbf16>, vector<8x32xf32> -> vector<8x32xf32>
    %106 = arith.addf %1, %105 : vector<8x32xf32>
    %107 = vector.broadcast %11 : vector<1x32xf32> to vector<8x32xf32>
    %108 = arith.addf %106, %107 : vector<8x32xf32>
    %cst_42 = arith.constant dense<0.000000e+00> : vector<8xf32>
    %109 = vector.multi_reduction <add>, %108, %cst_42 [1] : vector<8x32xf32> to vector<8xf32>
    %110 = vector.shape_cast %109 : vector<8xf32> to vector<8x1xf32>
    %cst_43 = arith.constant 3.200000e+01 : f32
    %111 = vector.broadcast %cst_43 : f32 to vector<8x1xf32>
    %112 = arith.divf %110, %111 : vector<8x1xf32>
    %113 = vector.broadcast %112 : vector<8x1xf32> to vector<8x32xf32>
    %114 = arith.subf %108, %113 : vector<8x32xf32>
    %115 = arith.mulf %114, %114 : vector<8x32xf32>
    %cst_44 = arith.constant dense<0.000000e+00> : vector<8xf32>
    %116 = vector.multi_reduction <add>, %115, %cst_44 [1] : vector<8x32xf32> to vector<8xf32>
    %117 = vector.shape_cast %116 : vector<8xf32> to vector<8x1xf32>
    %cst_45 = arith.constant 3.200000e+01 : f32
    %118 = vector.broadcast %cst_45 : f32 to vector<8x1xf32>
    %119 = arith.divf %117, %118 : vector<8x1xf32>
    %cst_46 = arith.constant 9.99999974E-6 : f32
    %120 = vector.broadcast %cst_46 : f32 to vector<8x1xf32>
    %121 = arith.addf %119, %120 : vector<8x1xf32>
    %122 = math.rsqrt %121 : vector<8x1xf32>
    %123 = vector.broadcast %122 : vector<8x1xf32> to vector<8x32xf32>
    %124 = arith.mulf %114, %123 : vector<8x32xf32>
    %125 = vector.broadcast %12 : vector<1x32xf32> to vector<8x32xf32>
    %126 = arith.mulf %124, %125 : vector<8x32xf32>
    %127 = vector.broadcast %13 : vector<1x32xf32> to vector<8x32xf32>
    %128 = arith.addf %126, %127 : vector<8x32xf32>
    %c0_47 = arith.constant 0 : index
    %c0_48 = arith.constant 0 : index
    %c0_49 = arith.constant 0 : index
    %129 = vector.load %arg8[%c0_47, %c0_48, %c0_49] : memref<1x8x32xf32, #tpu.memory_space<vmem>>, vector<1x8x32xf32>
    %130 = vector.shape_cast %129 : vector<1x8x32xf32> to vector<8x32xf32>
    %131 = vector.shape_cast %128 : vector<8x32xf32> to vector<1x8x32xf32>
    tpu.vector_store %arg8[%c0_47, %c0_48, %c0_49], %131 {strides = array<i32>} : memref<1x8x32xf32, #tpu.memory_space<vmem>>, vector<1x8x32xf32>,
    return
  }
  func.func @transform_0(%arg0: i32) -> (i32, i32, i32) {
    %c0_i32 = arith.constant 0 : i32
    %c0_i32_0 = arith.constant 0 : i32
    %c0_i32_1 = arith.constant 0 : i32
    return %arg0, %c0_i32, %c0_i32_0 : i32, i32, i32
  }
  func.func @transform_1(%arg0: i32) -> (i32, i32) {
    %c0_i32 = arith.constant 0 : i32
    %c0_i32_0 = arith.constant 0 : i32
    %c0_i32_1 = arith.constant 0 : i32
    return %c0_i32, %c0_i32_0 : i32, i32
  }
  func.func @transform_2(%arg0: i32) -> (i32, i32) {
    %c0_i32 = arith.constant 0 : i32
    %c0_i32_0 = arith.constant 0 : i32
    %c0_i32_1 = arith.constant 0 : i32
    return %c0_i32, %c0_i32_0 : i32, i32
  }
  func.func @transform_3(%arg0: i32) -> (i32, i32) {
    %c0_i32 = arith.constant 0 : i32
    %c0_i32_0 = arith.constant 0 : i32
    %c0_i32_1 = arith.constant 0 : i32
    return %c0_i32, %c0_i32_0 : i32, i32
  }
  func.func @transform_4(%arg0: i32) -> (i32, i32) {
    %c0_i32 = arith.constant 0 : i32
    %c0_i32_0 = arith.constant 0 : i32
    %c0_i32_1 = arith.constant 0 : i32
    return %c0_i32, %c0_i32_0 : i32, i32
  }
  func.func @transform_5(%arg0: i32) -> (i32, i32) {
    %c0_i32 = arith.constant 0 : i32
    %c0_i32_0 = arith.constant 0 : i32
    %c0_i32_1 = arith.constant 0 : i32
    return %c0_i32, %c0_i32_0 : i32, i32
  }
  func.func @transform_6(%arg0: i32) -> (i32, i32) {
    %c0_i32 = arith.constant 0 : i32
    %c0_i32_0 = arith.constant 0 : i32
    %c0_i32_1 = arith.constant 0 : i32
    return %c0_i32, %c0_i32_0 : i32, i32
  }
  func.func @transform_7(%arg0: i32) -> (i32, i32, i32) {
    %c0_i32 = arith.constant 0 : i32
    %c0_i32_0 = arith.constant 0 : i32
    %c0_i32_1 = arith.constant 0 : i32
    return %arg0, %c0_i32, %c0_i32_0 : i32, i32, i32
  }
}

module attributes {stable_mosaic.version = 11 : i64} {
  func.func @_ffn_ln_kernel(%arg0: i32, %arg1: i32, %arg2: memref<16x32xf32, #tpu.memory_space<vmem>>, %arg3: memref<32x64xbf16, #tpu.memory_space<vmem>>, %arg4: memref<1x64xf32, #tpu.memory_space<vmem>>, %arg5: memref<64x32xbf16, #tpu.memory_space<vmem>>, %arg6: memref<1x32xf32, #tpu.memory_space<vmem>>, %arg7: memref<1x32xf32, #tpu.memory_space<vmem>>, %arg8: memref<1x32xf32, #tpu.memory_space<vmem>>, %arg9: memref<16x32xf32, #tpu.memory_space<vmem>>, %arg10: memref<16x32xf32, #tpu.memory_space<vmem>>) attributes {dimension_semantics = [#tpu.dimension_semantics<parallel>, #tpu.dimension_semantics<arbitrary>], iteration_bounds = array<i64: 1, 1>, scalar_prefetch = 0 : i64, scratch_operands = 1 : i64, tpu.core_type = #tpu.core_type<tc>, window_params = [{transform_indices = @transform_0, window_bounds = array<i64: 16, 32>}, {transform_indices = @transform_1, window_bounds = array<i64: 32, 64>}, {transform_indices = @transform_2, window_bounds = array<i64: 1, 64>}, {transform_indices = @transform_3, window_bounds = array<i64: 64, 32>}, {pipeline_mode = #tpu.pipeline_mode<synchronous>, transform_indices = @transform_4, window_bounds = array<i64: 1, 32>}, {pipeline_mode = #tpu.pipeline_mode<synchronous>, transform_indices = @transform_5, window_bounds = array<i64: 1, 32>}, {pipeline_mode = #tpu.pipeline_mode<synchronous>, transform_indices = @transform_6, window_bounds = array<i64: 1, 32>}, {transform_indices = @transform_7, window_bounds = array<i64: 16, 32>}]} {
    %c0_i32 = arith.constant 0 : i32
    %0 = arith.cmpi eq, %arg1, %c0_i32 : i32
    %1 = arith.extui %0 : i1 to i32
    %c0_i32_0 = arith.constant 0 : i32
    %2 = arith.cmpi ne, %1, %c0_i32_0 : i32
    scf.if %2 {
      %cst_16 = arith.constant 0.000000e+00 : f32
      %21 = vector.broadcast %cst_16 : f32 to vector<16x32xf32>
      %c0_17 = arith.constant 0 : index
      %c0_18 = arith.constant 0 : index
      %22 = vector.load %arg10[%c0_17, %c0_18] : memref<16x32xf32, #tpu.memory_space<vmem>>, vector<16x32xf32>
      tpu.vector_store %arg10[%c0_17, %c0_18], %21 {strides = array<i32>} : memref<16x32xf32, #tpu.memory_space<vmem>>, vector<16x32xf32>,
    } else {
    }
    %c0 = arith.constant 0 : index
    %c0_1 = arith.constant 0 : index
    %3 = vector.load %arg2[%c0, %c0_1] : memref<16x32xf32, #tpu.memory_space<vmem>>, vector<16x32xf32>
    %4 = arith.truncf %3 : vector<16x32xf32> to vector<16x32xbf16>
    %c0_2 = arith.constant 0 : index
    %c0_3 = arith.constant 0 : index
    %5 = vector.load %arg3[%c0_2, %c0_3] : memref<32x64xbf16, #tpu.memory_space<vmem>>, vector<32x64xbf16>
    %cst = arith.constant dense<0.000000e+00> : vector<16x64xf32>
    %6 = tpu.matmul %4, %5, %cst {dimension_numbers = #tpu.dot_dimension_numbers<[1], [0], [0], [1], [0, 0, 1, 1], [], []>} : vector<16x32xbf16>, vector<32x64xbf16>, vector<16x64xf32> -> vector<16x64xf32>
    %c0_4 = arith.constant 0 : index
    %c0_5 = arith.constant 0 : index
    %7 = vector.load %arg4[%c0_4, %c0_5] : memref<1x64xf32, #tpu.memory_space<vmem>>, vector<1x64xf32>
    %8 = vector.broadcast %7 : vector<1x64xf32> to vector<16x64xf32>
    %9 = arith.addf %6, %8 : vector<16x64xf32>
    %cst_6 = arith.constant 0.000000e+00 : f32
    %10 = vector.broadcast %cst_6 : f32 to vector<16x64xf32>
    %11 = arith.maximumf %9, %10 : vector<16x64xf32>
    %c0_7 = arith.constant 0 : index
    %c0_8 = arith.constant 0 : index
    %12 = vector.load %arg10[%c0_7, %c0_8] : memref<16x32xf32, #tpu.memory_space<vmem>>, vector<16x32xf32>
    %13 = arith.truncf %11 : vector<16x64xf32> to vector<16x64xbf16>
    %c0_9 = arith.constant 0 : index
    %c0_10 = arith.constant 0 : index
    %14 = vector.load %arg5[%c0_9, %c0_10] : memref<64x32xbf16, #tpu.memory_space<vmem>>, vector<64x32xbf16>
    %cst_11 = arith.constant dense<0.000000e+00> : vector<16x32xf32>
    %15 = tpu.matmul %13, %14, %cst_11 {dimension_numbers = #tpu.dot_dimension_numbers<[1], [0], [0], [1], [0, 0, 1, 1], [], []>} : vector<16x64xbf16>, vector<64x32xbf16>, vector<16x32xf32> -> vector<16x32xf32>
    %16 = arith.addf %12, %15 : vector<16x32xf32>
    %c0_12 = arith.constant 0 : index
    %c0_13 = arith.constant 0 : index
    %17 = vector.load %arg10[%c0_12, %c0_13] : memref<16x32xf32, #tpu.memory_space<vmem>>, vector<16x32xf32>
    tpu.vector_store %arg10[%c0_12, %c0_13], %16 {strides = array<i32>} : memref<16x32xf32, #tpu.memory_space<vmem>>, vector<16x32xf32>,
    %c0_i32_14 = arith.constant 0 : i32
    %18 = arith.cmpi eq, %arg1, %c0_i32_14 : i32
    %19 = arith.extui %18 : i1 to i32
    %c0_i32_15 = arith.constant 0 : i32
    %20 = arith.cmpi ne, %19, %c0_i32_15 : i32
    scf.if %20 {
      %c0_16 = arith.constant 0 : index
      %c0_17 = arith.constant 0 : index
      %21 = vector.load %arg10[%c0_16, %c0_17] : memref<16x32xf32, #tpu.memory_space<vmem>>, vector<16x32xf32>
      %22 = arith.addf %3, %21 : vector<16x32xf32>
      %c0_18 = arith.constant 0 : index
      %c0_19 = arith.constant 0 : index
      %23 = vector.load %arg6[%c0_18, %c0_19] : memref<1x32xf32, #tpu.memory_space<vmem>>, vector<1x32xf32>
      %24 = vector.broadcast %23 : vector<1x32xf32> to vector<16x32xf32>
      %25 = arith.addf %22, %24 : vector<16x32xf32>
      %c0_20 = arith.constant 0 : index
      %c0_21 = arith.constant 0 : index
      %26 = vector.load %arg7[%c0_20, %c0_21] : memref<1x32xf32, #tpu.memory_space<vmem>>, vector<1x32xf32>
      %c0_22 = arith.constant 0 : index
      %c0_23 = arith.constant 0 : index
      %27 = vector.load %arg8[%c0_22, %c0_23] : memref<1x32xf32, #tpu.memory_space<vmem>>, vector<1x32xf32>
      %cst_24 = arith.constant dense<0.000000e+00> : vector<16xf32>
      %28 = vector.multi_reduction <add>, %25, %cst_24 [1] : vector<16x32xf32> to vector<16xf32>
      %29 = vector.shape_cast %28 : vector<16xf32> to vector<16x1xf32>
      %cst_25 = arith.constant 3.200000e+01 : f32
      %30 = vector.broadcast %cst_25 : f32 to vector<16x1xf32>
      %31 = arith.divf %29, %30 : vector<16x1xf32>
      %32 = vector.broadcast %31 : vector<16x1xf32> to vector<16x32xf32>
      %33 = arith.subf %25, %32 : vector<16x32xf32>
      %34 = arith.mulf %33, %33 : vector<16x32xf32>
      %cst_26 = arith.constant dense<0.000000e+00> : vector<16xf32>
      %35 = vector.multi_reduction <add>, %34, %cst_26 [1] : vector<16x32xf32> to vector<16xf32>
      %36 = vector.shape_cast %35 : vector<16xf32> to vector<16x1xf32>
      %cst_27 = arith.constant 3.200000e+01 : f32
      %37 = vector.broadcast %cst_27 : f32 to vector<16x1xf32>
      %38 = arith.divf %36, %37 : vector<16x1xf32>
      %cst_28 = arith.constant 9.99999974E-6 : f32
      %39 = vector.broadcast %cst_28 : f32 to vector<16x1xf32>
      %40 = arith.addf %38, %39 : vector<16x1xf32>
      %41 = math.rsqrt %40 : vector<16x1xf32>
      %42 = vector.broadcast %41 : vector<16x1xf32> to vector<16x32xf32>
      %43 = arith.mulf %33, %42 : vector<16x32xf32>
      %44 = vector.broadcast %26 : vector<1x32xf32> to vector<16x32xf32>
      %45 = arith.mulf %43, %44 : vector<16x32xf32>
      %46 = vector.broadcast %27 : vector<1x32xf32> to vector<16x32xf32>
      %47 = arith.addf %45, %46 : vector<16x32xf32>
      %c0_29 = arith.constant 0 : index
      %c0_30 = arith.constant 0 : index
      %48 = vector.load %arg9[%c0_29, %c0_30] : memref<16x32xf32, #tpu.memory_space<vmem>>, vector<16x32xf32>
      tpu.vector_store %arg9[%c0_29, %c0_30], %47 {strides = array<i32>} : memref<16x32xf32, #tpu.memory_space<vmem>>, vector<16x32xf32>,
    } else {
    }
    return
  }
  func.func @transform_0(%arg0: i32, %arg1: i32) -> (i32, i32) {
    %c0_i32 = arith.constant 0 : i32
    %c0_i32_0 = arith.constant 0 : i32
    return %arg0, %c0_i32 : i32, i32
  }
  func.func @transform_1(%arg0: i32, %arg1: i32) -> (i32, i32) {
    %c0_i32 = arith.constant 0 : i32
    %c0_i32_0 = arith.constant 0 : i32
    return %c0_i32, %arg1 : i32, i32
  }
  func.func @transform_2(%arg0: i32, %arg1: i32) -> (i32, i32) {
    %c0_i32 = arith.constant 0 : i32
    %c0_i32_0 = arith.constant 0 : i32
    return %c0_i32, %arg1 : i32, i32
  }
  func.func @transform_3(%arg0: i32, %arg1: i32) -> (i32, i32) {
    %c0_i32 = arith.constant 0 : i32
    %c0_i32_0 = arith.constant 0 : i32
    return %arg1, %c0_i32 : i32, i32
  }
  func.func @transform_4(%arg0: i32, %arg1: i32) -> (i32, i32) {
    %c0_i32 = arith.constant 0 : i32
    %c0_i32_0 = arith.constant 0 : i32
    %c0_i32_1 = arith.constant 0 : i32
    return %c0_i32, %c0_i32_0 : i32, i32
  }
  func.func @transform_5(%arg0: i32, %arg1: i32) -> (i32, i32) {
    %c0_i32 = arith.constant 0 : i32
    %c0_i32_0 = arith.constant 0 : i32
    %c0_i32_1 = arith.constant 0 : i32
    return %c0_i32, %c0_i32_0 : i32, i32
  }
  func.func @transform_6(%arg0: i32, %arg1: i32) -> (i32, i32) {
    %c0_i32 = arith.constant 0 : i32
    %c0_i32_0 = arith.constant 0 : i32
    %c0_i32_1 = arith.constant 0 : i32
    return %c0_i32, %c0_i32_0 : i32, i32
  }
  func.func @transform_7(%arg0: i32, %arg1: i32) -> (i32, i32) {
    %c0_i32 = arith.constant 0 : i32
    %c0_i32_0 = arith.constant 0 : i32
    return %arg0, %c0_i32 : i32, i32
  }
}

module attributes {stable_mosaic.version = 11 : i64} {
  func.func @_ffn_ln_kernel(%arg0: i32, %arg1: i32, %arg2: memref<16x32xf32, #tpu.memory_space<vmem>>, %arg3: memref<32x64xbf16, #tpu.memory_space<vmem>>, %arg4: memref<1x64xf32, #tpu.memory_space<vmem>>, %arg5: memref<64x32xbf16, #tpu.memory_space<vmem>>, %arg6: memref<1x32xf32, #tpu.memory_space<vmem>>, %arg7: memref<1x32xf32, #tpu.memory_space<vmem>>, %arg8: memref<1x32xf32, #tpu.memory_space<vmem>>, %arg9: memref<1x32xf32, #tpu.memory_space<vmem>>, %arg10: memref<1x32xf32, #tpu.memory_space<vmem>>, %arg11: memref<16x32xf32, #tpu.memory_space<vmem>>, %arg12: memref<16x32xf32, #tpu.memory_space<vmem>>) attributes {dimension_semantics = [#tpu.dimension_semantics<parallel>, #tpu.dimension_semantics<arbitrary>], iteration_bounds = array<i64: 1, 1>, scalar_prefetch = 0 : i64, scratch_operands = 1 : i64, tpu.core_type = #tpu.core_type<tc>, window_params = [{transform_indices = @transform_0, window_bounds = array<i64: 16, 32>}, {transform_indices = @transform_1, window_bounds = array<i64: 32, 64>}, {transform_indices = @transform_2, window_bounds = array<i64: 1, 64>}, {transform_indices = @transform_3, window_bounds = array<i64: 64, 32>}, {pipeline_mode = #tpu.pipeline_mode<synchronous>, transform_indices = @transform_4, window_bounds = array<i64: 1, 32>}, {pipeline_mode = #tpu.pipeline_mode<synchronous>, transform_indices = @transform_5, window_bounds = array<i64: 1, 32>}, {pipeline_mode = #tpu.pipeline_mode<synchronous>, transform_indices = @transform_6, window_bounds = array<i64: 1, 32>}, {pipeline_mode = #tpu.pipeline_mode<synchronous>, transform_indices = @transform_7, window_bounds = array<i64: 1, 32>}, {pipeline_mode = #tpu.pipeline_mode<synchronous>, transform_indices = @transform_8, window_bounds = array<i64: 1, 32>}, {transform_indices = @transform_9, window_bounds = array<i64: 16, 32>}]} {
    %c0_i32 = arith.constant 0 : i32
    %0 = arith.cmpi eq, %arg1, %c0_i32 : i32
    %1 = arith.extui %0 : i1 to i32
    %c0_i32_0 = arith.constant 0 : i32
    %2 = arith.cmpi ne, %1, %c0_i32_0 : i32
    scf.if %2 {
      %cst_16 = arith.constant 0.000000e+00 : f32
      %21 = vector.broadcast %cst_16 : f32 to vector<16x32xf32>
      %c0_17 = arith.constant 0 : index
      %c0_18 = arith.constant 0 : index
      %22 = vector.load %arg12[%c0_17, %c0_18] : memref<16x32xf32, #tpu.memory_space<vmem>>, vector<16x32xf32>
      tpu.vector_store %arg12[%c0_17, %c0_18], %21 {strides = array<i32>} : memref<16x32xf32, #tpu.memory_space<vmem>>, vector<16x32xf32>,
    } else {
    }
    %c0 = arith.constant 0 : index
    %c0_1 = arith.constant 0 : index
    %3 = vector.load %arg2[%c0, %c0_1] : memref<16x32xf32, #tpu.memory_space<vmem>>, vector<16x32xf32>
    %4 = arith.truncf %3 : vector<16x32xf32> to vector<16x32xbf16>
    %c0_2 = arith.constant 0 : index
    %c0_3 = arith.constant 0 : index
    %5 = vector.load %arg3[%c0_2, %c0_3] : memref<32x64xbf16, #tpu.memory_space<vmem>>, vector<32x64xbf16>
    %cst = arith.constant dense<0.000000e+00> : vector<16x64xf32>
    %6 = tpu.matmul %4, %5, %cst {dimension_numbers = #tpu.dot_dimension_numbers<[1], [0], [0], [1], [0, 0, 1, 1], [], []>} : vector<16x32xbf16>, vector<32x64xbf16>, vector<16x64xf32> -> vector<16x64xf32>
    %c0_4 = arith.constant 0 : index
    %c0_5 = arith.constant 0 : index
    %7 = vector.load %arg4[%c0_4, %c0_5] : memref<1x64xf32, #tpu.memory_space<vmem>>, vector<1x64xf32>
    %8 = vector.broadcast %7 : vector<1x64xf32> to vector<16x64xf32>
    %9 = arith.addf %6, %8 : vector<16x64xf32>
    %cst_6 = arith.constant 0.000000e+00 : f32
    %10 = vector.broadcast %cst_6 : f32 to vector<16x64xf32>
    %11 = arith.maximumf %9, %10 : vector<16x64xf32>
    %c0_7 = arith.constant 0 : index
    %c0_8 = arith.constant 0 : index
    %12 = vector.load %arg12[%c0_7, %c0_8] : memref<16x32xf32, #tpu.memory_space<vmem>>, vector<16x32xf32>
    %13 = arith.truncf %11 : vector<16x64xf32> to vector<16x64xbf16>
    %c0_9 = arith.constant 0 : index
    %c0_10 = arith.constant 0 : index
    %14 = vector.load %arg5[%c0_9, %c0_10] : memref<64x32xbf16, #tpu.memory_space<vmem>>, vector<64x32xbf16>
    %cst_11 = arith.constant dense<0.000000e+00> : vector<16x32xf32>
    %15 = tpu.matmul %13, %14, %cst_11 {dimension_numbers = #tpu.dot_dimension_numbers<[1], [0], [0], [1], [0, 0, 1, 1], [], []>} : vector<16x64xbf16>, vector<64x32xbf16>, vector<16x32xf32> -> vector<16x32xf32>
    %16 = arith.addf %12, %15 : vector<16x32xf32>
    %c0_12 = arith.constant 0 : index
    %c0_13 = arith.constant 0 : index
    %17 = vector.load %arg12[%c0_12, %c0_13] : memref<16x32xf32, #tpu.memory_space<vmem>>, vector<16x32xf32>
    tpu.vector_store %arg12[%c0_12, %c0_13], %16 {strides = array<i32>} : memref<16x32xf32, #tpu.memory_space<vmem>>, vector<16x32xf32>,
    %c0_i32_14 = arith.constant 0 : i32
    %18 = arith.cmpi eq, %arg1, %c0_i32_14 : i32
    %19 = arith.extui %18 : i1 to i32
    %c0_i32_15 = arith.constant 0 : i32
    %20 = arith.cmpi ne, %19, %c0_i32_15 : i32
    scf.if %20 {
      %c0_16 = arith.constant 0 : index
      %c0_17 = arith.constant 0 : index
      %21 = vector.load %arg12[%c0_16, %c0_17] : memref<16x32xf32, #tpu.memory_space<vmem>>, vector<16x32xf32>
      %22 = arith.addf %3, %21 : vector<16x32xf32>
      %c0_18 = arith.constant 0 : index
      %c0_19 = arith.constant 0 : index
      %23 = vector.load %arg6[%c0_18, %c0_19] : memref<1x32xf32, #tpu.memory_space<vmem>>, vector<1x32xf32>
      %24 = vector.broadcast %23 : vector<1x32xf32> to vector<16x32xf32>
      %25 = arith.addf %22, %24 : vector<16x32xf32>
      %c0_20 = arith.constant 0 : index
      %c0_21 = arith.constant 0 : index
      %26 = vector.load %arg7[%c0_20, %c0_21] : memref<1x32xf32, #tpu.memory_space<vmem>>, vector<1x32xf32>
      %c0_22 = arith.constant 0 : index
      %c0_23 = arith.constant 0 : index
      %27 = vector.load %arg8[%c0_22, %c0_23] : memref<1x32xf32, #tpu.memory_space<vmem>>, vector<1x32xf32>
      %cst_24 = arith.constant dense<0.000000e+00> : vector<16xf32>
      %28 = vector.multi_reduction <add>, %25, %cst_24 [1] : vector<16x32xf32> to vector<16xf32>
      %29 = vector.shape_cast %28 : vector<16xf32> to vector<16x1xf32>
      %cst_25 = arith.constant 3.200000e+01 : f32
      %30 = vector.broadcast %cst_25 : f32 to vector<16x1xf32>
      %31 = arith.divf %29, %30 : vector<16x1xf32>
      %32 = vector.broadcast %31 : vector<16x1xf32> to vector<16x32xf32>
      %33 = arith.subf %25, %32 : vector<16x32xf32>
      %34 = arith.mulf %33, %33 : vector<16x32xf32>
      %cst_26 = arith.constant dense<0.000000e+00> : vector<16xf32>
      %35 = vector.multi_reduction <add>, %34, %cst_26 [1] : vector<16x32xf32> to vector<16xf32>
      %36 = vector.shape_cast %35 : vector<16xf32> to vector<16x1xf32>
      %cst_27 = arith.constant 3.200000e+01 : f32
      %37 = vector.broadcast %cst_27 : f32 to vector<16x1xf32>
      %38 = arith.divf %36, %37 : vector<16x1xf32>
      %cst_28 = arith.constant 9.99999974E-6 : f32
      %39 = vector.broadcast %cst_28 : f32 to vector<16x1xf32>
      %40 = arith.addf %38, %39 : vector<16x1xf32>
      %41 = math.rsqrt %40 : vector<16x1xf32>
      %42 = vector.broadcast %41 : vector<16x1xf32> to vector<16x32xf32>
      %43 = arith.mulf %33, %42 : vector<16x32xf32>
      %44 = vector.broadcast %26 : vector<1x32xf32> to vector<16x32xf32>
      %45 = arith.mulf %43, %44 : vector<16x32xf32>
      %46 = vector.broadcast %27 : vector<1x32xf32> to vector<16x32xf32>
      %47 = arith.addf %45, %46 : vector<16x32xf32>
      %c0_29 = arith.constant 0 : index
      %c0_30 = arith.constant 0 : index
      %48 = vector.load %arg9[%c0_29, %c0_30] : memref<1x32xf32, #tpu.memory_space<vmem>>, vector<1x32xf32>
      %c0_31 = arith.constant 0 : index
      %c0_32 = arith.constant 0 : index
      %49 = vector.load %arg10[%c0_31, %c0_32] : memref<1x32xf32, #tpu.memory_space<vmem>>, vector<1x32xf32>
      %cst_33 = arith.constant dense<0.000000e+00> : vector<16xf32>
      %50 = vector.multi_reduction <add>, %47, %cst_33 [1] : vector<16x32xf32> to vector<16xf32>
      %51 = vector.shape_cast %50 : vector<16xf32> to vector<16x1xf32>
      %cst_34 = arith.constant 3.200000e+01 : f32
      %52 = vector.broadcast %cst_34 : f32 to vector<16x1xf32>
      %53 = arith.divf %51, %52 : vector<16x1xf32>
      %54 = vector.broadcast %53 : vector<16x1xf32> to vector<16x32xf32>
      %55 = arith.subf %47, %54 : vector<16x32xf32>
      %56 = arith.mulf %55, %55 : vector<16x32xf32>
      %cst_35 = arith.constant dense<0.000000e+00> : vector<16xf32>
      %57 = vector.multi_reduction <add>, %56, %cst_35 [1] : vector<16x32xf32> to vector<16xf32>
      %58 = vector.shape_cast %57 : vector<16xf32> to vector<16x1xf32>
      %cst_36 = arith.constant 3.200000e+01 : f32
      %59 = vector.broadcast %cst_36 : f32 to vector<16x1xf32>
      %60 = arith.divf %58, %59 : vector<16x1xf32>
      %cst_37 = arith.constant 9.99999974E-6 : f32
      %61 = vector.broadcast %cst_37 : f32 to vector<16x1xf32>
      %62 = arith.addf %60, %61 : vector<16x1xf32>
      %63 = math.rsqrt %62 : vector<16x1xf32>
      %64 = vector.broadcast %63 : vector<16x1xf32> to vector<16x32xf32>
      %65 = arith.mulf %55, %64 : vector<16x32xf32>
      %66 = vector.broadcast %48 : vector<1x32xf32> to vector<16x32xf32>
      %67 = arith.mulf %65, %66 : vector<16x32xf32>
      %68 = vector.broadcast %49 : vector<1x32xf32> to vector<16x32xf32>
      %69 = arith.addf %67, %68 : vector<16x32xf32>
      %c0_38 = arith.constant 0 : index
      %c0_39 = arith.constant 0 : index
      %70 = vector.load %arg11[%c0_38, %c0_39] : memref<16x32xf32, #tpu.memory_space<vmem>>, vector<16x32xf32>
      tpu.vector_store %arg11[%c0_38, %c0_39], %69 {strides = array<i32>} : memref<16x32xf32, #tpu.memory_space<vmem>>, vector<16x32xf32>,
    } else {
    }
    return
  }
  func.func @transform_0(%arg0: i32, %arg1: i32) -> (i32, i32) {
    %c0_i32 = arith.constant 0 : i32
    %c0_i32_0 = arith.constant 0 : i32
    return %arg0, %c0_i32 : i32, i32
  }
  func.func @transform_1(%arg0: i32, %arg1: i32) -> (i32, i32) {
    %c0_i32 = arith.constant 0 : i32
    %c0_i32_0 = arith.constant 0 : i32
    return %c0_i32, %arg1 : i32, i32
  }
  func.func @transform_2(%arg0: i32, %arg1: i32) -> (i32, i32) {
    %c0_i32 = arith.constant 0 : i32
    %c0_i32_0 = arith.constant 0 : i32
    return %c0_i32, %arg1 : i32, i32
  }
  func.func @transform_3(%arg0: i32, %arg1: i32) -> (i32, i32) {
    %c0_i32 = arith.constant 0 : i32
    %c0_i32_0 = arith.constant 0 : i32
    return %arg1, %c0_i32 : i32, i32
  }
  func.func @transform_4(%arg0: i32, %arg1: i32) -> (i32, i32) {
    %c0_i32 = arith.constant 0 : i32
    %c0_i32_0 = arith.constant 0 : i32
    %c0_i32_1 = arith.constant 0 : i32
    return %c0_i32, %c0_i32_0 : i32, i32
  }
  func.func @transform_5(%arg0: i32, %arg1: i32) -> (i32, i32) {
    %c0_i32 = arith.constant 0 : i32
    %c0_i32_0 = arith.constant 0 : i32
    %c0_i32_1 = arith.constant 0 : i32
    return %c0_i32, %c0_i32_0 : i32, i32
  }
  func.func @transform_6(%arg0: i32, %arg1: i32) -> (i32, i32) {
    %c0_i32 = arith.constant 0 : i32
    %c0_i32_0 = arith.constant 0 : i32
    %c0_i32_1 = arith.constant 0 : i32
    return %c0_i32, %c0_i32_0 : i32, i32
  }
  func.func @transform_7(%arg0: i32, %arg1: i32) -> (i32, i32) {
    %c0_i32 = arith.constant 0 : i32
    %c0_i32_0 = arith.constant 0 : i32
    %c0_i32_1 = arith.constant 0 : i32
    return %c0_i32, %c0_i32_0 : i32, i32
  }
  func.func @transform_8(%arg0: i32, %arg1: i32) -> (i32, i32) {
    %c0_i32 = arith.constant 0 : i32
    %c0_i32_0 = arith.constant 0 : i32
    %c0_i32_1 = arith.constant 0 : i32
    return %c0_i32, %c0_i32_0 : i32, i32
  }
  func.func @transform_9(%arg0: i32, %arg1: i32) -> (i32, i32) {
    %c0_i32 = arith.constant 0 : i32
    %c0_i32_0 = arith.constant 0 : i32
    return %arg0, %c0_i32 : i32, i32
  }
}

module attributes {stable_mosaic.version = 11 : i64} {
  func.func @_cross_attn_ln_kernel(%arg0: i32, %arg1: memref<1x8x32xf32, #tpu.memory_space<vmem>>, %arg2: memref<1x8x32xf32, #tpu.memory_space<vmem>>, %arg3: memref<32x32xbf16, #tpu.memory_space<vmem>>, %arg4: memref<1x32xf32, #tpu.memory_space<vmem>>, %arg5: memref<32x64xbf16, #tpu.memory_space<vmem>>, %arg6: memref<1x64xf32, #tpu.memory_space<vmem>>, %arg7: memref<32x32xbf16, #tpu.memory_space<vmem>>, %arg8: memref<1x32xf32, #tpu.memory_space<vmem>>, %arg9: memref<1x32xf32, #tpu.memory_space<vmem>>, %arg10: memref<1x32xf32, #tpu.memory_space<vmem>>, %arg11: memref<1x8x32xf32, #tpu.memory_space<vmem>>, %arg12: memref<8x32xf32, #tpu.memory_space<vmem>>) attributes {dimension_semantics = [#tpu.dimension_semantics<parallel>], iteration_bounds = array<i64: 2>, scalar_prefetch = 0 : i64, scratch_operands = 1 : i64, tpu.core_type = #tpu.core_type<tc>, window_params = [{transform_indices = @transform_0, window_bounds = array<i64: 1, 8, 32>}, {transform_indices = @transform_1, window_bounds = array<i64: 1, 8, 32>}, {pipeline_mode = #tpu.pipeline_mode<synchronous>, transform_indices = @transform_2, window_bounds = array<i64: 32, 32>}, {pipeline_mode = #tpu.pipeline_mode<synchronous>, transform_indices = @transform_3, window_bounds = array<i64: 1, 32>}, {pipeline_mode = #tpu.pipeline_mode<synchronous>, transform_indices = @transform_4, window_bounds = array<i64: 32, 64>}, {pipeline_mode = #tpu.pipeline_mode<synchronous>, transform_indices = @transform_5, window_bounds = array<i64: 1, 64>}, {pipeline_mode = #tpu.pipeline_mode<synchronous>, transform_indices = @transform_6, window_bounds = array<i64: 32, 32>}, {pipeline_mode = #tpu.pipeline_mode<synchronous>, transform_indices = @transform_7, window_bounds = array<i64: 1, 32>}, {pipeline_mode = #tpu.pipeline_mode<synchronous>, transform_indices = @transform_8, window_bounds = array<i64: 1, 32>}, {pipeline_mode = #tpu.pipeline_mode<synchronous>, transform_indices = @transform_9, window_bounds = array<i64: 1, 32>}, {transform_indices = @transform_10, window_bounds = array<i64: 1, 8, 32>}]} {
    %c0 = arith.constant 0 : index
    %c0_0 = arith.constant 0 : index
    %c0_1 = arith.constant 0 : index
    %0 = vector.load %arg1[%c0, %c0_0, %c0_1] : memref<1x8x32xf32, #tpu.memory_space<vmem>>, vector<1x8x32xf32>
    %1 = vector.shape_cast %0 : vector<1x8x32xf32> to vector<8x32xf32>
    %c0_2 = arith.constant 0 : index
    %c0_3 = arith.constant 0 : index
    %c0_4 = arith.constant 0 : index
    %2 = vector.load %arg2[%c0_2, %c0_3, %c0_4] : memref<1x8x32xf32, #tpu.memory_space<vmem>>, vector<1x8x32xf32>
    %3 = vector.shape_cast %2 : vector<1x8x32xf32> to vector<8x32xf32>
    %4 = arith.truncf %1 : vector<8x32xf32> to vector<8x32xbf16>
    %c0_5 = arith.constant 0 : index
    %c0_6 = arith.constant 0 : index
    %5 = vector.load %arg3[%c0_5, %c0_6] : memref<32x32xbf16, #tpu.memory_space<vmem>>, vector<32x32xbf16>
    %cst = arith.constant dense<0.000000e+00> : vector<8x32xf32>
    %6 = tpu.matmul %4, %5, %cst {dimension_numbers = #tpu.dot_dimension_numbers<[1], [0], [0], [1], [0, 0, 1, 1], [], []>} : vector<8x32xbf16>, vector<32x32xbf16>, vector<8x32xf32> -> vector<8x32xf32>
    %c0_7 = arith.constant 0 : index
    %c0_8 = arith.constant 0 : index
    %7 = vector.load %arg4[%c0_7, %c0_8] : memref<1x32xf32, #tpu.memory_space<vmem>>, vector<1x32xf32>
    %8 = vector.broadcast %7 : vector<1x32xf32> to vector<8x32xf32>
    %9 = arith.addf %6, %8 : vector<8x32xf32>
    %10 = arith.truncf %3 : vector<8x32xf32> to vector<8x32xbf16>
    %c0_9 = arith.constant 0 : index
    %c0_10 = arith.constant 0 : index
    %11 = vector.load %arg5[%c0_9, %c0_10] : memref<32x64xbf16, #tpu.memory_space<vmem>>, vector<32x64xbf16>
    %cst_11 = arith.constant dense<0.000000e+00> : vector<8x64xf32>
    %12 = tpu.matmul %10, %11, %cst_11 {dimension_numbers = #tpu.dot_dimension_numbers<[1], [0], [0], [1], [0, 0, 1, 1], [], []>} : vector<8x32xbf16>, vector<32x64xbf16>, vector<8x64xf32> -> vector<8x64xf32>
    %c0_12 = arith.constant 0 : index
    %c0_13 = arith.constant 0 : index
    %13 = vector.load %arg6[%c0_12, %c0_13] : memref<1x64xf32, #tpu.memory_space<vmem>>, vector<1x64xf32>
    %14 = vector.broadcast %13 : vector<1x64xf32> to vector<8x64xf32>
    %15 = arith.addf %12, %14 : vector<8x64xf32>
    %16 = vector.extract_strided_slice %15 {offsets = [0, 0], sizes = [8, 32], strides = [1, 1]} : vector<8x64xf32> to vector<8x32xf32>
    %17 = vector.extract_strided_slice %15 {offsets = [0, 32], sizes = [8, 32], strides = [1, 1]} : vector<8x64xf32> to vector<8x32xf32>
    %c0_14 = arith.constant 0 : index
    %c0_15 = arith.constant 0 : index
    %18 = vector.load %arg8[%c0_14, %c0_15] : memref<1x32xf32, #tpu.memory_space<vmem>>, vector<1x32xf32>
    %c0_16 = arith.constant 0 : index
    %c0_17 = arith.constant 0 : index
    %19 = vector.load %arg9[%c0_16, %c0_17] : memref<1x32xf32, #tpu.memory_space<vmem>>, vector<1x32xf32>
    %c0_18 = arith.constant 0 : index
    %c0_19 = arith.constant 0 : index
    %20 = vector.load %arg10[%c0_18, %c0_19] : memref<1x32xf32, #tpu.memory_space<vmem>>, vector<1x32xf32>
    %21 = vector.extract_strided_slice %9 {offsets = [0, 0], sizes = [8, 8], strides = [1, 1]} : vector<8x32xf32> to vector<8x8xf32>
    %cst_20 = arith.constant 0.353553385 : f32
    %22 = vector.broadcast %cst_20 : f32 to vector<8x8xf32>
    %23 = arith.mulf %21, %22 : vector<8x8xf32>
    %24 = arith.truncf %23 : vector<8x8xf32> to vector<8x8xbf16>
    %25 = vector.extract_strided_slice %16 {offsets = [0, 0], sizes = [8, 8], strides = [1, 1]} : vector<8x32xf32> to vector<8x8xf32>
    %26 = arith.truncf %25 : vector<8x8xf32> to vector<8x8xbf16>
    %27 = vector.extract_strided_slice %17 {offsets = [0, 0], sizes = [8, 8], strides = [1, 1]} : vector<8x32xf32> to vector<8x8xf32>
    %28 = arith.truncf %27 : vector<8x8xf32> to vector<8x8xbf16>
    %cst_21 = arith.constant dense<0.000000e+00> : vector<8x8xf32>
    %29 = tpu.matmul %24, %26, %cst_21 {dimension_numbers = #tpu.dot_dimension_numbers<[1], [1], [0], [0], [0, 0, 1, 0], [], []>} : vector<8x8xbf16>, vector<8x8xbf16>, vector<8x8xf32> -> vector<8x8xf32>
    %cst_22 = arith.constant dense<0xFF800000> : vector<8xf32>
    %30 = vector.multi_reduction <maximumf>, %29, %cst_22 [1] : vector<8x8xf32> to vector<8xf32>
    %31 = vector.shape_cast %30 : vector<8xf32> to vector<8x1xf32>
    %32 = vector.broadcast %31 : vector<8x1xf32> to vector<8x8xf32>
    %33 = arith.subf %29, %32 : vector<8x8xf32>
    %34 = math.exp %33 : vector<8x8xf32>
    %cst_23 = arith.constant dense<0.000000e+00> : vector<8xf32>
    %35 = vector.multi_reduction <add>, %34, %cst_23 [1] : vector<8x8xf32> to vector<8xf32>
    %36 = vector.shape_cast %35 : vector<8xf32> to vector<8x1xf32>
    %37 = tpu.reciprocal %36 {approx = true} : vector<8x1xf32> -> vector<8x1xf32>
    %38 = vector.broadcast %37 : vector<8x1xf32> to vector<8x8xf32>
    %39 = arith.mulf %34, %38 : vector<8x8xf32>
    %40 = arith.truncf %39 : vector<8x8xf32> to vector<8x8xbf16>
    %cst_24 = arith.constant dense<0.000000e+00> : vector<8x8xf32>
    %41 = tpu.matmul %40, %28, %cst_24 {dimension_numbers = #tpu.dot_dimension_numbers<[1], [0], [0], [1], [0, 0, 1, 1], [], []>} : vector<8x8xbf16>, vector<8x8xbf16>, vector<8x8xf32> -> vector<8x8xf32>
    %c0_25 = arith.constant 0 : index
    %c0_26 = arith.constant 0 : index
    %42 = vector.load %arg12[%c0_25, %c0_26] : memref<8x32xf32, #tpu.memory_space<vmem>>, vector<8x8xf32>
    tpu.vector_store %arg12[%c0_25, %c0_26], %41 {strides = array<i32>} : memref<8x32xf32, #tpu.memory_space<vmem>>, vector<8x8xf32>,
    %43 = vector.extract_strided_slice %9 {offsets = [0, 8], sizes = [8, 8], strides = [1, 1]} : vector<8x32xf32> to vector<8x8xf32>
    %cst_27 = arith.constant 0.353553385 : f32
    %44 = vector.broadcast %cst_27 : f32 to vector<8x8xf32>
    %45 = arith.mulf %43, %44 : vector<8x8xf32>
    %46 = arith.truncf %45 : vector<8x8xf32> to vector<8x8xbf16>
    %47 = vector.extract_strided_slice %16 {offsets = [0, 8], sizes = [8, 8], strides = [1, 1]} : vector<8x32xf32> to vector<8x8xf32>
    %48 = arith.truncf %47 : vector<8x8xf32> to vector<8x8xbf16>
    %49 = vector.extract_strided_slice %17 {offsets = [0, 8], sizes = [8, 8], strides = [1, 1]} : vector<8x32xf32> to vector<8x8xf32>
    %50 = arith.truncf %49 : vector<8x8xf32> to vector<8x8xbf16>
    %cst_28 = arith.constant dense<0.000000e+00> : vector<8x8xf32>
    %51 = tpu.matmul %46, %48, %cst_28 {dimension_numbers = #tpu.dot_dimension_numbers<[1], [1], [0], [0], [0, 0, 1, 0], [], []>} : vector<8x8xbf16>, vector<8x8xbf16>, vector<8x8xf32> -> vector<8x8xf32>
    %cst_29 = arith.constant dense<0xFF800000> : vector<8xf32>
    %52 = vector.multi_reduction <maximumf>, %51, %cst_29 [1] : vector<8x8xf32> to vector<8xf32>
    %53 = vector.shape_cast %52 : vector<8xf32> to vector<8x1xf32>
    %54 = vector.broadcast %53 : vector<8x1xf32> to vector<8x8xf32>
    %55 = arith.subf %51, %54 : vector<8x8xf32>
    %56 = math.exp %55 : vector<8x8xf32>
    %cst_30 = arith.constant dense<0.000000e+00> : vector<8xf32>
    %57 = vector.multi_reduction <add>, %56, %cst_30 [1] : vector<8x8xf32> to vector<8xf32>
    %58 = vector.shape_cast %57 : vector<8xf32> to vector<8x1xf32>
    %59 = tpu.reciprocal %58 {approx = true} : vector<8x1xf32> -> vector<8x1xf32>
    %60 = vector.broadcast %59 : vector<8x1xf32> to vector<8x8xf32>
    %61 = arith.mulf %56, %60 : vector<8x8xf32>
    %62 = arith.truncf %61 : vector<8x8xf32> to vector<8x8xbf16>
    %cst_31 = arith.constant dense<0.000000e+00> : vector<8x8xf32>
    %63 = tpu.matmul %62, %50, %cst_31 {dimension_numbers = #tpu.dot_dimension_numbers<[1], [0], [0], [1], [0, 0, 1, 1], [], []>} : vector<8x8xbf16>, vector<8x8xbf16>, vector<8x8xf32> -> vector<8x8xf32>
    %c0_32 = arith.constant 0 : index
    %c8 = arith.constant 8 : index
    %64 = vector.load %arg12[%c0_32, %c8] : memref<8x32xf32, #tpu.memory_space<vmem>>, vector<8x8xf32>
    tpu.vector_store %arg12[%c0_32, %c8], %63 {strides = array<i32>} : memref<8x32xf32, #tpu.memory_space<vmem>>, vector<8x8xf32>,
    %65 = vector.extract_strided_slice %9 {offsets = [0, 16], sizes = [8, 8], strides = [1, 1]} : vector<8x32xf32> to vector<8x8xf32>
    %cst_33 = arith.constant 0.353553385 : f32
    %66 = vector.broadcast %cst_33 : f32 to vector<8x8xf32>
    %67 = arith.mulf %65, %66 : vector<8x8xf32>
    %68 = arith.truncf %67 : vector<8x8xf32> to vector<8x8xbf16>
    %69 = vector.extract_strided_slice %16 {offsets = [0, 16], sizes = [8, 8], strides = [1, 1]} : vector<8x32xf32> to vector<8x8xf32>
    %70 = arith.truncf %69 : vector<8x8xf32> to vector<8x8xbf16>
    %71 = vector.extract_strided_slice %17 {offsets = [0, 16], sizes = [8, 8], strides = [1, 1]} : vector<8x32xf32> to vector<8x8xf32>
    %72 = arith.truncf %71 : vector<8x8xf32> to vector<8x8xbf16>
    %cst_34 = arith.constant dense<0.000000e+00> : vector<8x8xf32>
    %73 = tpu.matmul %68, %70, %cst_34 {dimension_numbers = #tpu.dot_dimension_numbers<[1], [1], [0], [0], [0, 0, 1, 0], [], []>} : vector<8x8xbf16>, vector<8x8xbf16>, vector<8x8xf32> -> vector<8x8xf32>
    %cst_35 = arith.constant dense<0xFF800000> : vector<8xf32>
    %74 = vector.multi_reduction <maximumf>, %73, %cst_35 [1] : vector<8x8xf32> to vector<8xf32>
    %75 = vector.shape_cast %74 : vector<8xf32> to vector<8x1xf32>
    %76 = vector.broadcast %75 : vector<8x1xf32> to vector<8x8xf32>
    %77 = arith.subf %73, %76 : vector<8x8xf32>
    %78 = math.exp %77 : vector<8x8xf32>
    %cst_36 = arith.constant dense<0.000000e+00> : vector<8xf32>
    %79 = vector.multi_reduction <add>, %78, %cst_36 [1] : vector<8x8xf32> to vector<8xf32>
    %80 = vector.shape_cast %79 : vector<8xf32> to vector<8x1xf32>
    %81 = tpu.reciprocal %80 {approx = true} : vector<8x1xf32> -> vector<8x1xf32>
    %82 = vector.broadcast %81 : vector<8x1xf32> to vector<8x8xf32>
    %83 = arith.mulf %78, %82 : vector<8x8xf32>
    %84 = arith.truncf %83 : vector<8x8xf32> to vector<8x8xbf16>
    %cst_37 = arith.constant dense<0.000000e+00> : vector<8x8xf32>
    %85 = tpu.matmul %84, %72, %cst_37 {dimension_numbers = #tpu.dot_dimension_numbers<[1], [0], [0], [1], [0, 0, 1, 1], [], []>} : vector<8x8xbf16>, vector<8x8xbf16>, vector<8x8xf32> -> vector<8x8xf32>
    %c0_38 = arith.constant 0 : index
    %c16 = arith.constant 16 : index
    %86 = vector.load %arg12[%c0_38, %c16] : memref<8x32xf32, #tpu.memory_space<vmem>>, vector<8x8xf32>
    tpu.vector_store %arg12[%c0_38, %c16], %85 {strides = array<i32>} : memref<8x32xf32, #tpu.memory_space<vmem>>, vector<8x8xf32>,
    %87 = vector.extract_strided_slice %9 {offsets = [0, 24], sizes = [8, 8], strides = [1, 1]} : vector<8x32xf32> to vector<8x8xf32>
    %cst_39 = arith.constant 0.353553385 : f32
    %88 = vector.broadcast %cst_39 : f32 to vector<8x8xf32>
    %89 = arith.mulf %87, %88 : vector<8x8xf32>
    %90 = arith.truncf %89 : vector<8x8xf32> to vector<8x8xbf16>
    %91 = vector.extract_strided_slice %16 {offsets = [0, 24], sizes = [8, 8], strides = [1, 1]} : vector<8x32xf32> to vector<8x8xf32>
    %92 = arith.truncf %91 : vector<8x8xf32> to vector<8x8xbf16>
    %93 = vector.extract_strided_slice %17 {offsets = [0, 24], sizes = [8, 8], strides = [1, 1]} : vector<8x32xf32> to vector<8x8xf32>
    %94 = arith.truncf %93 : vector<8x8xf32> to vector<8x8xbf16>
    %cst_40 = arith.constant dense<0.000000e+00> : vector<8x8xf32>
    %95 = tpu.matmul %90, %92, %cst_40 {dimension_numbers = #tpu.dot_dimension_numbers<[1], [1], [0], [0], [0, 0, 1, 0], [], []>} : vector<8x8xbf16>, vector<8x8xbf16>, vector<8x8xf32> -> vector<8x8xf32>
    %cst_41 = arith.constant dense<0xFF800000> : vector<8xf32>
    %96 = vector.multi_reduction <maximumf>, %95, %cst_41 [1] : vector<8x8xf32> to vector<8xf32>
    %97 = vector.shape_cast %96 : vector<8xf32> to vector<8x1xf32>
    %98 = vector.broadcast %97 : vector<8x1xf32> to vector<8x8xf32>
    %99 = arith.subf %95, %98 : vector<8x8xf32>
    %100 = math.exp %99 : vector<8x8xf32>
    %cst_42 = arith.constant dense<0.000000e+00> : vector<8xf32>
    %101 = vector.multi_reduction <add>, %100, %cst_42 [1] : vector<8x8xf32> to vector<8xf32>
    %102 = vector.shape_cast %101 : vector<8xf32> to vector<8x1xf32>
    %103 = tpu.reciprocal %102 {approx = true} : vector<8x1xf32> -> vector<8x1xf32>
    %104 = vector.broadcast %103 : vector<8x1xf32> to vector<8x8xf32>
    %105 = arith.mulf %100, %104 : vector<8x8xf32>
    %106 = arith.truncf %105 : vector<8x8xf32> to vector<8x8xbf16>
    %cst_43 = arith.constant dense<0.000000e+00> : vector<8x8xf32>
    %107 = tpu.matmul %106, %94, %cst_43 {dimension_numbers = #tpu.dot_dimension_numbers<[1], [0], [0], [1], [0, 0, 1, 1], [], []>} : vector<8x8xbf16>, vector<8x8xbf16>, vector<8x8xf32> -> vector<8x8xf32>
    %c0_44 = arith.constant 0 : index
    %c24 = arith.constant 24 : index
    %108 = vector.load %arg12[%c0_44, %c24] : memref<8x32xf32, #tpu.memory_space<vmem>>, vector<8x8xf32>
    tpu.vector_store %arg12[%c0_44, %c24], %107 {strides = array<i32>} : memref<8x32xf32, #tpu.memory_space<vmem>>, vector<8x8xf32>,
    %c0_45 = arith.constant 0 : index
    %c0_46 = arith.constant 0 : index
    %109 = vector.load %arg12[%c0_45, %c0_46] : memref<8x32xf32, #tpu.memory_space<vmem>>, vector<8x32xf32>
    %110 = arith.truncf %109 : vector<8x32xf32> to vector<8x32xbf16>
    %c0_47 = arith.constant 0 : index
    %c0_48 = arith.constant 0 : index
    %111 = vector.load %arg7[%c0_47, %c0_48] : memref<32x32xbf16, #tpu.memory_space<vmem>>, vector<32x32xbf16>
    %cst_49 = arith.constant dense<0.000000e+00> : vector<8x32xf32>
    %112 = tpu.matmul %110, %111, %cst_49 {dimension_numbers = #tpu.dot_dimension_numbers<[1], [0], [0], [1], [0, 0, 1, 1], [], []>} : vector<8x32xbf16>, vector<32x32xbf16>, vector<8x32xf32> -> vector<8x32xf32>
    %113 = arith.addf %1, %112 : vector<8x32xf32>
    %114 = vector.broadcast %18 : vector<1x32xf32> to vector<8x32xf32>
    %115 = arith.addf %113, %114 : vector<8x32xf32>
    %cst_50 = arith.constant dense<0.000000e+00> : vector<8xf32>
    %116 = vector.multi_reduction <add>, %115, %cst_50 [1] : vector<8x32xf32> to vector<8xf32>
    %117 = vector.shape_cast %116 : vector<8xf32> to vector<8x1xf32>
    %cst_51 = arith.constant 3.200000e+01 : f32
    %118 = vector.broadcast %cst_51 : f32 to vector<8x1xf32>
    %119 = arith.divf %117, %118 : vector<8x1xf32>
    %120 = vector.broadcast %119 : vector<8x1xf32> to vector<8x32xf32>
    %121 = arith.subf %115, %120 : vector<8x32xf32>
    %122 = arith.mulf %121, %121 : vector<8x32xf32>
    %cst_52 = arith.constant dense<0.000000e+00> : vector<8xf32>
    %123 = vector.multi_reduction <add>, %122, %cst_52 [1] : vector<8x32xf32> to vector<8xf32>
    %124 = vector.shape_cast %123 : vector<8xf32> to vector<8x1xf32>
    %cst_53 = arith.constant 3.200000e+01 : f32
    %125 = vector.broadcast %cst_53 : f32 to vector<8x1xf32>
    %126 = arith.divf %124, %125 : vector<8x1xf32>
    %cst_54 = arith.constant 9.99999974E-6 : f32
    %127 = vector.broadcast %cst_54 : f32 to vector<8x1xf32>
    %128 = arith.addf %126, %127 : vector<8x1xf32>
    %129 = math.rsqrt %128 : vector<8x1xf32>
    %130 = vector.broadcast %129 : vector<8x1xf32> to vector<8x32xf32>
    %131 = arith.mulf %121, %130 : vector<8x32xf32>
    %132 = vector.broadcast %19 : vector<1x32xf32> to vector<8x32xf32>
    %133 = arith.mulf %131, %132 : vector<8x32xf32>
    %134 = vector.broadcast %20 : vector<1x32xf32> to vector<8x32xf32>
    %135 = arith.addf %133, %134 : vector<8x32xf32>
    %c0_55 = arith.constant 0 : index
    %c0_56 = arith.constant 0 : index
    %c0_57 = arith.constant 0 : index
    %136 = vector.load %arg11[%c0_55, %c0_56, %c0_57] : memref<1x8x32xf32, #tpu.memory_space<vmem>>, vector<1x8x32xf32>
    %137 = vector.shape_cast %136 : vector<1x8x32xf32> to vector<8x32xf32>
    %138 = vector.shape_cast %135 : vector<8x32xf32> to vector<1x8x32xf32>
    tpu.vector_store %arg11[%c0_55, %c0_56, %c0_57], %138 {strides = array<i32>} : memref<1x8x32xf32, #tpu.memory_space<vmem>>, vector<1x8x32xf32>,
    return
  }
  func.func @transform_0(%arg0: i32) -> (i32, i32, i32) {
    %c0_i32 = arith.constant 0 : i32
    %c0_i32_0 = arith.constant 0 : i32
    %c0_i32_1 = arith.constant 0 : i32
    return %arg0, %c0_i32, %c0_i32_0 : i32, i32, i32
  }
  func.func @transform_1(%arg0: i32) -> (i32, i32, i32) {
    %c0_i32 = arith.constant 0 : i32
    %c0_i32_0 = arith.constant 0 : i32
    %c0_i32_1 = arith.constant 0 : i32
    return %arg0, %c0_i32, %c0_i32_0 : i32, i32, i32
  }
  func.func @transform_2(%arg0: i32) -> (i32, i32) {
    %c0_i32 = arith.constant 0 : i32
    %c0_i32_0 = arith.constant 0 : i32
    %c0_i32_1 = arith.constant 0 : i32
    return %c0_i32, %c0_i32_0 : i32, i32
  }
  func.func @transform_3(%arg0: i32) -> (i32, i32) {
    %c0_i32 = arith.constant 0 : i32
    %c0_i32_0 = arith.constant 0 : i32
    %c0_i32_1 = arith.constant 0 : i32
    return %c0_i32, %c0_i32_0 : i32, i32
  }
  func.func @transform_4(%arg0: i32) -> (i32, i32) {
    %c0_i32 = arith.constant 0 : i32
    %c0_i32_0 = arith.constant 0 : i32
    %c0_i32_1 = arith.constant 0 : i32
    return %c0_i32, %c0_i32_0 : i32, i32
  }
  func.func @transform_5(%arg0: i32) -> (i32, i32) {
    %c0_i32 = arith.constant 0 : i32
    %c0_i32_0 = arith.constant 0 : i32
    %c0_i32_1 = arith.constant 0 : i32
    return %c0_i32, %c0_i32_0 : i32, i32
  }
  func.func @transform_6(%arg0: i32) -> (i32, i32) {
    %c0_i32 = arith.constant 0 : i32
    %c0_i32_0 = arith.constant 0 : i32
    %c0_i32_1 = arith.constant 0 : i32
    return %c0_i32, %c0_i32_0 : i32, i32
  }
  func.func @transform_7(%arg0: i32) -> (i32, i32) {
    %c0_i32 = arith.constant 0 : i32
    %c0_i32_0 = arith.constant 0 : i32
    %c0_i32_1 = arith.constant 0 : i32
    return %c0_i32, %c0_i32_0 : i32, i32
  }
  func.func @transform_8(%arg0: i32) -> (i32, i32) {
    %c0_i32 = arith.constant 0 : i32
    %c0_i32_0 = arith.constant 0 : i32
    %c0_i32_1 = arith.constant 0 : i32
    return %c0_i32, %c0_i32_0 : i32, i32
  }
  func.func @transform_9(%arg0: i32) -> (i32, i32) {
    %c0_i32 = arith.constant 0 : i32
    %c0_i32_0 = arith.constant 0 : i32
    %c0_i32_1 = arith.constant 0 : i32
    return %c0_i32, %c0_i32_0 : i32, i32
  }
  func.func @transform_10(%arg0: i32) -> (i32, i32, i32) {
    %c0_i32 = arith.constant 0 : i32
    %c0_i32_0 = arith.constant 0 : i32
    %c0_i32_1 = arith.constant 0 : i32
    return %arg0, %c0_i32, %c0_i32_0 : i32, i32, i32
  }
}

module attributes {stable_mosaic.version = 11 : i64} {
  func.func @_matmul_bias_kernel(%arg0: i32, %arg1: i32, %arg2: i32, %arg3: memref<16x32xbf16, #tpu.memory_space<vmem>>, %arg4: memref<32x128xbf16, #tpu.memory_space<vmem>>, %arg5: memref<1x128xf32, #tpu.memory_space<vmem>>, %arg6: memref<16x128xf32, #tpu.memory_space<vmem>>, %arg7: memref<16x128xf32, #tpu.memory_space<vmem>>) attributes {dimension_semantics = [#tpu.dimension_semantics<parallel>, #tpu.dimension_semantics<parallel>, #tpu.dimension_semantics<arbitrary>], iteration_bounds = array<i64: 1, 1, 1>, scalar_prefetch = 0 : i64, scratch_operands = 1 : i64, tpu.core_type = #tpu.core_type<tc>, window_params = [{transform_indices = @transform_0, window_bounds = array<i64: 16, 32>}, {transform_indices = @transform_1, window_bounds = array<i64: 32, 128>}, {transform_indices = @transform_2, window_bounds = array<i64: 1, 128>}, {transform_indices = @transform_3, window_bounds = array<i64: 16, 128>}]} {
    %c0_i32 = arith.constant 0 : i32
    %0 = arith.cmpi eq, %arg2, %c0_i32 : i32
    %1 = arith.extui %0 : i1 to i32
    %c0_i32_0 = arith.constant 0 : i32
    %2 = arith.cmpi ne, %1, %c0_i32_0 : i32
    scf.if %2 {
      %cst_10 = arith.constant 0.000000e+00 : f32
      %12 = vector.broadcast %cst_10 : f32 to vector<16x128xf32>
      %c0_11 = arith.constant 0 : index
      %c0_12 = arith.constant 0 : index
      %13 = vector.load %arg7[%c0_11, %c0_12] : memref<16x128xf32, #tpu.memory_space<vmem>>, vector<16x128xf32>
      tpu.vector_store %arg7[%c0_11, %c0_12], %12 {strides = array<i32>} : memref<16x128xf32, #tpu.memory_space<vmem>>, vector<16x128xf32>,
    } else {
    }
    %c0 = arith.constant 0 : index
    %c0_1 = arith.constant 0 : index
    %3 = vector.load %arg7[%c0, %c0_1] : memref<16x128xf32, #tpu.memory_space<vmem>>, vector<16x128xf32>
    %c0_2 = arith.constant 0 : index
    %c0_3 = arith.constant 0 : index
    %4 = vector.load %arg3[%c0_2, %c0_3] : memref<16x32xbf16, #tpu.memory_space<vmem>>, vector<16x32xbf16>
    %c0_4 = arith.constant 0 : index
    %c0_5 = arith.constant 0 : index
    %5 = vector.load %arg4[%c0_4, %c0_5] : memref<32x128xbf16, #tpu.memory_space<vmem>>, vector<32x128xbf16>
    %cst = arith.constant dense<0.000000e+00> : vector<16x128xf32>
    %6 = tpu.matmul %4, %5, %cst {dimension_numbers = #tpu.dot_dimension_numbers<[1], [0], [0], [1], [0, 0, 1, 1], [], []>} : vector<16x32xbf16>, vector<32x128xbf16>, vector<16x128xf32> -> vector<16x128xf32>
    %7 = arith.addf %3, %6 : vector<16x128xf32>
    %c0_6 = arith.constant 0 : index
    %c0_7 = arith.constant 0 : index
    %8 = vector.load %arg7[%c0_6, %c0_7] : memref<16x128xf32, #tpu.memory_space<vmem>>, vector<16x128xf32>
    tpu.vector_store %arg7[%c0_6, %c0_7], %7 {strides = array<i32>} : memref<16x128xf32, #tpu.memory_space<vmem>>, vector<16x128xf32>,
    %c0_i32_8 = arith.constant 0 : i32
    %9 = arith.cmpi eq, %arg2, %c0_i32_8 : i32
    %10 = arith.extui %9 : i1 to i32
    %c0_i32_9 = arith.constant 0 : i32
    %11 = arith.cmpi ne, %10, %c0_i32_9 : i32
    scf.if %11 {
      %c0_10 = arith.constant 0 : index
      %c0_11 = arith.constant 0 : index
      %12 = vector.load %arg7[%c0_10, %c0_11] : memref<16x128xf32, #tpu.memory_space<vmem>>, vector<16x128xf32>
      %c0_12 = arith.constant 0 : index
      %c0_13 = arith.constant 0 : index
      %13 = vector.load %arg5[%c0_12, %c0_13] : memref<1x128xf32, #tpu.memory_space<vmem>>, vector<1x128xf32>
      %14 = vector.broadcast %13 : vector<1x128xf32> to vector<16x128xf32>
      %15 = arith.addf %12, %14 : vector<16x128xf32>
      %c0_14 = arith.constant 0 : index
      %c0_15 = arith.constant 0 : index
      %16 = vector.load %arg6[%c0_14, %c0_15] : memref<16x128xf32, #tpu.memory_space<vmem>>, vector<16x128xf32>
      tpu.vector_store %arg6[%c0_14, %c0_15], %15 {strides = array<i32>} : memref<16x128xf32, #tpu.memory_space<vmem>>, vector<16x128xf32>,
    } else {
    }
    return
  }
  func.func @transform_0(%arg0: i32, %arg1: i32, %arg2: i32) -> (i32, i32) {
    %c0_i32 = arith.constant 0 : i32
    return %arg0, %arg2 : i32, i32
  }
  func.func @transform_1(%arg0: i32, %arg1: i32, %arg2: i32) -> (i32, i32) {
    %c0_i32 = arith.constant 0 : i32
    return %arg2, %arg1 : i32, i32
  }
  func.func @transform_2(%arg0: i32, %arg1: i32, %arg2: i32) -> (i32, i32) {
    %c0_i32 = arith.constant 0 : i32
    %c0_i32_0 = arith.constant 0 : i32
    return %c0_i32, %arg1 : i32, i32
  }
  func.func @transform_3(%arg0: i32, %arg1: i32, %arg2: i32) -> (i32, i32) {
    %c0_i32 = arith.constant 0 : i32
    return %arg0, %arg1 : i32, i32
  }
}

</mosaic_0001>

<bundles_post_ra>
// kernel: music_transformer_forward.12
= control target key start
LH: loop header
LB: loop body
LE: loop exit
PB: predicated region body
PF: predicated region fallthrough
CT: control target
= control target key end

     0   :  { %vm31_vm0 = vcmask 261120   ;;  %v310_v0 = vmov 0.0   ;;  %vm311_vm1 = vmmov 0   ;;  %vm142_vm2 = vcmask 523264   ;;  %s405_s1 = inlined_call_operand.vmem [shape: bf16[32,64], index: 1, kind: input, shape index: {}]   ;;  %s406_s0 = inlined_call_operand.vmem [shape: f32[16,32], index: 0, kind: input, shape index: {}]   ;;  %s407_s3 = inlined_call_operand.vmem [shape: bf16[64,32], index: 3, kind: input, shape index: {}]   ;;  %s408_s2 = inlined_call_operand.vmem [shape: f32[1,64], index: 2, kind: input, shape index: {}]   ;;  %s409_s4 = inlined_call_operand.vmem [shape: f32[1,32], index: 4, kind: input, shape index: {}]   ;;  %s410_s5 = inlined_call_operand.vmem [shape: f32[1,32], index: 5, kind: input, shape index: {}]   ;;  %s411_s6 = inlined_call_operand.vmem [shape: f32[1,32], index: 6, kind: input, shape index: {}]   ;;  %s412_s7 = inlined_call_operand.vmem [shape: f32[16,32], index: 7, kind: output, shape index: {}]  }
   0x1   :  { %278 = vmatprep.subr.bf16.mxu0 %v310_v0  ;;  %v300_v1 = vld [vmem:[%s405_s1 + $0x8] sm:$0xff]   ;;  %282 = vmatprep.mubr.msk.bf16.mxu0 %vm311_vm1, %v310_v0  ;;  %32 = vst.msk [vmem:[#allocation2] sm:$0xff] %vm31_vm0, %v310_v0  ;;  %33 = vst.msk [vmem:[#allocation2 + $0x8] sm:$0xff] %vm31_vm0, %v310_v0  ;;  %v301_v2 = vld [vmem:[%s405_s1] sm:$0xff]  }
   0x2   :  { %286 = vmatprep.subr.bf16.mxu1 %v310_v0  ;;  %294 = vmatprep.mubr.msk.bf16.mxu1 %vm311_vm1, %v310_v0  ;;  %v34_v3 = vld [vmem:[%s406_s0] sm:$0xff]  ;;  %v35_v4 = vld [vmem:[%s406_s0 + $0x8] sm:$0xff]  ;;  %v302_v5 = vld [vmem:[%s407_s3 + $0x18] sm:$0xff]  }
   0x3   :  { %279 = vmatpush3.bf16.msra.mxu0 %v300_v1  ;;  %v36_v6 = vpack.c.bf16 %v35_v4, %v34_v3  ;;  %287 = vmatpush3.bf16.msra.mxu1 %v302_v5  ;;  %v303_v7 = vld [vmem:[%s407_s3 + $0x10] sm:$0xff]   ;;  %v304_v8 = vld [vmem:[%s407_s3 + $0x8] sm:$0xff]   ;;  %v305_v9 = vld [vmem:[%s407_s3] sm:$0xff]  }
   0x4   :  { %280 = vmatprep.subr.bf16.mxu0 %v310_v0  ;;  %288 = vmatprep.subr.bf16.mxu1 %v310_v0  ;;  %v258_v10 = vld [vmem:[%s408_s2] ss:$0 sm:$0xff] }
   0x5   :  { %v267_v29 = vld [vmem:[%s409_s4] ss:$0 sm:$0xff] }
   0x6   :  { %v268_v54 = vld [vmem:[%s410_s5] ss:$0 sm:$0xff] }
   0x7   :  { %281 = vmatpush3.bf16.msra.mxu0 %v301_v2  ;;  %289 = vmatpush3.bf16.msra.mxu1 %v303_v7  ;;  %v269_v56 = vld [vmem:[%s411_s6] ss:$0 sm:$0xff] }
   0x8   :  { %290 = vmatprep.subr.bf16.mxu1 %v310_v0  ;;  %v107_v20 = vld [vmem:[#allocation2] sm:$0xff]  ;;  %v108_v24 = vld [vmem:[#allocation2 + $0x8] sm:$0xff] }
   0xa   :  { %283 = vmatmul.mubr.msk.bf16.vlgmr.msra.gmra.mxu0 %vm31_vm0, %v36_v6 }
   0xb   :  { %291 = vmatpush3.bf16.msra.mxu1 %v304_v8 }
   0xc   :  { %292 = vmatprep.subr.bf16.mxu1 %v310_v0 }
   0xf   :  { %293 = vmatpush3.bf16.msra.mxu1 %v305_v9 }
  0xca   :  { %v98_v11 = vpop.f32.mrf.mxu0 }
  0xcb   :  { %v99_v13 = vadd.f32 %v258_v10, %v98_v11 }
  0xcc   :  { %v284_v12 = vpop.f32.mrf.mxu0 }
  0xcd   :  { %v105_v17 = vmax.f32 %v99_v13, 0.0 }
  0xce   :  { %v101_v14 = vpop.f32.mrf.mxu0 }
  0xcf   :  { %v102_v15 = vadd.f32 %v258_v10, %v101_v14 }
  0xd0   :  { %v285_v16 = vpop.f32.mrf.mxu0 }
  0xd1   :  { %v106_v18 = vmax.f32 %v102_v15, 0.0 }
  0xd3   :  { %v109_v19 = vpack.c.bf16 %v106_v18, %v105_v17 }
  0xd5   :  { %295 = vmatmul.mubr.msk.bf16.vlgmr.msra.gmra.mxu1 %vm142_vm2, %v109_v19 }
 0x195   :  { %v180_v21 = vpop.f32.mrf.mxu1 }
 0x196   :  { %v187_v22 = vadd.f32 %v180_v21, %v107_v20 }
 0x197   :  { %v296_v23 = vpop.f32.mrf.mxu1 }
 0x198   :  { %189 = vst.msk [vmem:[#allocation2] sm:$0xff] %vm31_vm0, %v187_v22 }
 0x199   :  { %v183_v25 = vpop.f32.mrf.mxu1 }
 0x19a   :  { %v188_v26 = vadd.f32 %v183_v25, %v108_v24 }
 0x19b   :  { %v297_v27 = vpop.f32.mrf.mxu1 }
 0x19c   :  { %190 = vst.msk [vmem:[#allocation2 + $0x8] sm:$0xff] %vm31_vm0, %v188_v26 }
 0x19f   :  { %v194_v28 = vld [vmem:[#allocation2] sm:$0xff] }
 0x1a0   :  { %v196_v30 = vadd.f32 %v194_v28, %v34_v3 }
 0x1a2   :  { %v205_v31 = vadd.f32 %v267_v29, %v196_v30 }
 0x1a3   :  { %v195_v32 = vld [vmem:[#allocation2 + $0x8] sm:$0xff] }
 0x1a4   :  { %v209_v33 = vsel %vm31_vm0, %v205_v31, 0.0  ;;  %v197_v34 = vadd.f32 %v195_v32, %v35_v4 }
 0x1a5   :  { %210 = vadd.xlane.f32.xlu0 %v209_v33 }
 0x1a6   :  { %v206_v35 = vadd.f32 %v267_v29, %v197_v34 }
 0x1a8   :  { %v212_v36 = vsel %vm31_vm0, %v206_v35, 0.0 }
 0x1a9   :  { %213 = vadd.xlane.f32.xlu0 %v212_v36 }
 0x22e   :  { %v211_v37 = vpop.xlane.xlu0 %210 }
 0x22f   :  { %v216_v38 = vmul.f32 0.03125, %v211_v37 }
 0x231   :  { %v218_v39 = vsub.f32 %v205_v31, %v216_v38 }
 0x232   :  { %v214_v40 = vpop.xlane.xlu0 %213 }
 0x233   :  { %v217_v41 = vmul.f32 0.03125, %v214_v40  ;;  %v220_v42 = vmul.f32 %v218_v39, %v218_v39 }
 0x235   :  { %v219_v43 = vsub.f32 %v206_v35, %v217_v41  ;;  %v222_v44 = vsel %vm31_vm0, %v220_v42, 0.0 }
 0x236   :  { %223 = vadd.xlane.f32.xlu1 %v222_v44 }
 0x237   :  { %v221_v45 = vmul.f32 %v219_v43, %v219_v43 }
 0x239   :  { %v225_v46 = vsel %vm31_vm0, %v221_v45, 0.0 }
 0x23a   :  { %226 = vadd.xlane.f32.xlu1 %v225_v46 }
 0x2bf   :  { %v224_v47 = vpop.xlane.xlu1 %223 }
 0x2c0   :  { %v228_v48 = vmul.f32 0.03125, %v224_v47 }
 0x2c2   :  { %v230_v49 = vadd.f32 1e-05, %v228_v48 }
 0x2c3   :  { %v227_v50 = vpop.xlane.xlu1 %226 }
 0x2c4   :  { %306 = vrsqrt.f32 %v230_v49  ;;  %v229_v51 = vmul.f32 0.03125, %v227_v50 }
 0x2c6   :  { %v231_v52 = vadd.f32 1e-05, %v229_v51 }
 0x2c8   :  { %308 = vrsqrt.f32 %v231_v52 }
 0x2d1   :  { %v307_v53 = vpop.eup %306 }
 0x2d2   :  { %v234_v55 = vmul.f32 %v307_v53, %v218_v39 }
 0x2d4   :  { %v242_v57 = vmul.f32 %v268_v54, %v234_v55 }
 0x2d5   :  { %v309_v58 = vpop.eup %308 }
 0x2d6   :  { %v250_v59 = vadd.f32 %v269_v56, %v242_v57  ;;  %v235_v60 = vmul.f32 %v309_v58, %v219_v43 }
 0x2d8   :  { %252 = vst.msk [vmem:[%s412_s7] sm:$0xff] %vm31_vm0, %v250_v59  ;;  %v243_v61 = vmul.f32 %v268_v54, %v235_v60 }
 0x2da   :  { %v251_v62 = vadd.f32 %v269_v56, %v243_v61 }
 0x2dc   :  { %253 = vst.msk [vmem:[%s412_s7 + $0x8] sm:$0xff] %vm31_vm0, %v251_v62 }

// kernel: music_transformer_forward.14
= control target key start
LH: loop header
LB: loop body
LE: loop exit
PB: predicated region body
PF: predicated region fallthrough
CT: control target
= control target key end

     0   :  { %vm37_vm0 = vcmask 261120   ;;  %v366_v0 = vmov 0.0   ;;  %vm367_vm1 = vmmov 0   ;;  %vm148_vm2 = vcmask 523264   ;;  %s481_s1 = inlined_call_operand.vmem [shape: bf16[32,64], index: 1, kind: input, shape index: {}]   ;;  %s482_s0 = inlined_call_operand.vmem [shape: f32[16,32], index: 0, kind: input, shape index: {}]   ;;  %s483_s3 = inlined_call_operand.vmem [shape: bf16[64,32], index: 3, kind: input, shape index: {}]   ;;  %s484_s2 = inlined_call_operand.vmem [shape: f32[1,64], index: 2, kind: input, shape index: {}]   ;;  %s485_s4 = inlined_call_operand.vmem [shape: f32[1,32], index: 4, kind: input, shape index: {}]   ;;  %s486_s5 = inlined_call_operand.vmem [shape: f32[1,32], index: 5, kind: input, shape index: {}]   ;;  %s487_s6 = inlined_call_operand.vmem [shape: f32[1,32], index: 6, kind: input, shape index: {}]   ;;  %s488_s7 = inlined_call_operand.vmem [shape: f32[1,32], index: 7, kind: input, shape index: {}]   ;;  %s489_s8 = inlined_call_operand.vmem [shape: f32[1,32], index: 8, kind: input, shape index: {}]   ;;  %s490_s9 = inlined_call_operand.vmem [shape: f32[16,32], index: 9, kind: output, shape index: {}]  }
   0x1   :  { %330 = vmatprep.subr.bf16.mxu0 %v366_v0  ;;  %v352_v1 = vld [vmem:[%s481_s1 + $0x8] sm:$0xff]   ;;  %334 = vmatprep.mubr.msk.bf16.mxu0 %vm367_vm1, %v366_v0  ;;  %38 = vst.msk [vmem:[#allocation2] sm:$0xff] %vm37_vm0, %v366_v0  ;;  %39 = vst.msk [vmem:[#allocation2 + $0x8] sm:$0xff] %vm37_vm0, %v366_v0  ;;  %v353_v2 = vld [vmem:[%s481_s1] sm:$0xff]  }
   0x2   :  { %338 = vmatprep.subr.bf16.mxu1 %v366_v0  ;;  %346 = vmatprep.mubr.msk.bf16.mxu1 %vm367_vm1, %v366_v0  ;;  %v40_v3 = vld [vmem:[%s482_s0] sm:$0xff]  ;;  %v41_v4 = vld [vmem:[%s482_s0 + $0x8] sm:$0xff]  ;;  %v354_v5 = vld [vmem:[%s483_s3 + $0x18] sm:$0xff]  }
   0x3   :  { %331 = vmatpush3.bf16.msra.mxu0 %v352_v1  ;;  %v42_v6 = vpack.c.bf16 %v41_v4, %v40_v3  ;;  %339 = vmatpush3.bf16.msra.mxu1 %v354_v5  ;;  %v355_v7 = vld [vmem:[%s483_s3 + $0x10] sm:$0xff]   ;;  %v356_v8 = vld [vmem:[%s483_s3 + $0x8] sm:$0xff]   ;;  %v357_v9 = vld [vmem:[%s483_s3] sm:$0xff]  }
   0x4   :  { %332 = vmatprep.subr.bf16.mxu0 %v366_v0  ;;  %340 = vmatprep.subr.bf16.mxu1 %v366_v0  ;;  %v308_v10 = vld [vmem:[%s484_s2] ss:$0 sm:$0xff] }
   0x5   :  { %v317_v29 = vld [vmem:[%s485_s4] ss:$0 sm:$0xff] }
   0x6   :  { %v318_v54 = vld [vmem:[%s486_s5] ss:$0 sm:$0xff] }
   0x7   :  { %333 = vmatpush3.bf16.msra.mxu0 %v353_v2  ;;  %341 = vmatpush3.bf16.msra.mxu1 %v355_v7  ;;  %v319_v56 = vld [vmem:[%s487_s6] ss:$0 sm:$0xff] }
   0x8   :  { %342 = vmatprep.subr.bf16.mxu1 %v366_v0  ;;  %v113_v20 = vld [vmem:[#allocation2] sm:$0xff]  ;;  %v114_v24 = vld [vmem:[#allocation2 + $0x8] sm:$0xff] }
   0xa   :  { %335 = vmatmul.mubr.msk.bf16.vlgmr.msra.gmra.mxu0 %vm37_vm0, %v42_v6 }
   0xb   :  { %343 = vmatpush3.bf16.msra.mxu1 %v356_v8 }
   0xc   :  { %344 = vmatprep.subr.bf16.mxu1 %v366_v0 }
   0xf   :  { %345 = vmatpush3.bf16.msra.mxu1 %v357_v9 }
  0xca   :  { %v104_v11 = vpop.f32.mrf.mxu0 }
  0xcb   :  { %v105_v13 = vadd.f32 %v308_v10, %v104_v11 }
  0xcc   :  { %v336_v12 = vpop.f32.mrf.mxu0 }
  0xcd   :  { %v111_v17 = vmax.f32 %v105_v13, 0.0 }
  0xce   :  { %v107_v14 = vpop.f32.mrf.mxu0 }
  0xcf   :  { %v108_v15 = vadd.f32 %v308_v10, %v107_v14 }
  0xd0   :  { %v337_v16 = vpop.f32.mrf.mxu0 }
  0xd1   :  { %v112_v18 = vmax.f32 %v108_v15, 0.0 }
  0xd3   :  { %v115_v19 = vpack.c.bf16 %v112_v18, %v111_v17  ;;  %v320_v18 = vld [vmem:[%s488_s7] ss:$0 sm:$0xff] }
  0xd5   :  { %347 = vmatmul.mubr.msk.bf16.vlgmr.msra.gmra.mxu1 %vm148_vm2, %v115_v19 }
 0x195   :  { %v186_v21 = vpop.f32.mrf.mxu1 }
 0x196   :  { %v193_v22 = vadd.f32 %v186_v21, %v113_v20  ;;  %v321_v20 = vld [vmem:[%s489_s8] ss:$0 sm:$0xff] }
 0x197   :  { %v348_v23 = vpop.f32.mrf.mxu1 }
 0x198   :  { %195 = vst.msk [vmem:[#allocation2] sm:$0xff] %vm37_vm0, %v193_v22 }
 0x199   :  { %v189_v25 = vpop.f32.mrf.mxu1 }
 0x19a   :  { %v194_v26 = vadd.f32 %v189_v25, %v114_v24 }
 0x19b   :  { %v349_v27 = vpop.f32.mrf.mxu1 }
 0x19c   :  { %196 = vst.msk [vmem:[#allocation2 + $0x8] sm:$0xff] %vm37_vm0, %v194_v26 }
 0x19f   :  { %v200_v28 = vld [vmem:[#allocation2] sm:$0xff] }
 0x1a0   :  { %v202_v30 = vadd.f32 %v200_v28, %v40_v3 }
 0x1a2   :  { %v211_v31 = vadd.f32 %v317_v29, %v202_v30 }
 0x1a3   :  { %v201_v32 = vld [vmem:[#allocation2 + $0x8] sm:$0xff] }
 0x1a4   :  { %v215_v33 = vsel %vm37_vm0, %v211_v31, 0.0  ;;  %v203_v34 = vadd.f32 %v201_v32, %v41_v4 }
 0x1a5   :  { %216 = vadd.xlane.f32.xlu0 %v215_v33 }
 0x1a6   :  { %v212_v35 = vadd.f32 %v317_v29, %v203_v34 }
 0x1a8   :  { %v218_v36 = vsel %vm37_vm0, %v212_v35, 0.0 }
 0x1a9   :  { %219 = vadd.xlane.f32.xlu0 %v218_v36 }
 0x22e   :  { %v217_v37 = vpop.xlane.xlu0 %216 }
 0x22f   :  { %v222_v38 = vmul.f32 0.03125, %v217_v37 }
 0x231   :  { %v224_v39 = vsub.f32 %v211_v31, %v222_v38 }
 0x232   :  { %v220_v40 = vpop.xlane.xlu0 %219 }
 0x233   :  { %v223_v41 = vmul.f32 0.03125, %v220_v40  ;;  %v226_v42 = vmul.f32 %v224_v39, %v224_v39 }
 0x235   :  { %v225_v43 = vsub.f32 %v212_v35, %v223_v41  ;;  %v228_v44 = vsel %vm37_vm0, %v226_v42, 0.0 }
 0x236   :  { %229 = vadd.xlane.f32.xlu1 %v228_v44 }
 0x237   :  { %v227_v45 = vmul.f32 %v225_v43, %v225_v43 }
 0x239   :  { %v231_v46 = vsel %vm37_vm0, %v227_v45, 0.0 }
 0x23a   :  { %232 = vadd.xlane.f32.xlu1 %v231_v46 }
 0x2bf   :  { %v230_v47 = vpop.xlane.xlu1 %229 }
 0x2c0   :  { %v234_v48 = vmul.f32 0.03125, %v230_v47 }
 0x2c2   :  { %v236_v49 = vadd.f32 1e-05, %v234_v48 }
 0x2c3   :  { %v233_v50 = vpop.xlane.xlu1 %232 }
 0x2c4   :  { %358 = vrsqrt.f32 %v236_v49  ;;  %v235_v51 = vmul.f32 0.03125, %v233_v50 }
 0x2c6   :  { %v237_v52 = vadd.f32 1e-05, %v235_v51 }
 0x2c8   :  { %360 = vrsqrt.f32 %v237_v52 }
 0x2d1   :  { %v359_v53 = vpop.eup %358 }
 0x2d2   :  { %v240_v55 = vmul.f32 %v359_v53, %v224_v39 }
 0x2d4   :  { %v248_v57 = vmul.f32 %v318_v54, %v240_v55 }
 0x2d5   :  { %v361_v58 = vpop.eup %360 }
 0x2d6   :  { %v256_v59 = vadd.f32 %v319_v56, %v248_v57  ;;  %v241_v60 = vmul.f32 %v361_v58, %v225_v43 }
 0x2d8   :  { %v260_v61 = vsel %vm37_vm0, %v256_v59, 0.0  ;;  %v249_v62 = vmul.f32 %v318_v54, %v241_v60 }
 0x2d9   :  { %261 = vadd.xlane.f32.xlu0 %v260_v61 }
 0x2da   :  { %v257_v63 = vadd.f32 %v319_v56, %v249_v62 }
 0x2dc   :  { %v263_v0 = vsel %vm37_vm0, %v257_v63, 0.0 }
 0x2dd   :  { %264 = vadd.xlane.f32.xlu1 %v263_v0 }
 0x362   :  { %v262_v1 = vpop.xlane.xlu0 %261 }
 0x363   :  { %v266_v2 = vmul.f32 0.03125, %v262_v1 }
 0x365   :  { %v268_v3 = vsub.f32 %v256_v59, %v266_v2 }
 0x366   :  { %v265_v4 = vpop.xlane.xlu1 %264 }
 0x367   :  { %v267_v5 = vmul.f32 0.03125, %v265_v4  ;;  %v270_v6 = vmul.f32 %v268_v3, %v268_v3 }
 0x369   :  { %v269_v7 = vsub.f32 %v257_v63, %v267_v5  ;;  %v272_v8 = vsel %vm37_vm0, %v270_v6, 0.0 }
 0x36a   :  { %273 = vadd.xlane.f32.xlu0 %v272_v8 }
 0x36b   :  { %v271_v9 = vmul.f32 %v269_v7, %v269_v7 }
 0x36d   :  { %v275_v10 = vsel %vm37_vm0, %v271_v9, 0.0 }
 0x36e   :  { %276 = vadd.xlane.f32.xlu1 %v275_v10 }
 0x3f3   :  { %v274_v11 = vpop.xlane.xlu0 %273 }
 0x3f4   :  { %v278_v12 = vmul.f32 0.03125, %v274_v11 }
 0x3f6   :  { %v280_v13 = vadd.f32 1e-05, %v278_v12 }
 0x3f7   :  { %v277_v14 = vpop.xlane.xlu1 %276 }
 0x3f8   :  { %362 = vrsqrt.f32 %v280_v13  ;;  %v279_v15 = vmul.f32 0.03125, %v277_v14 }
 0x3fa   :  { %v281_v16 = vadd.f32 1e-05, %v279_v15 }
 0x3fc   :  { %364 = vrsqrt.f32 %v281_v16 }
 0x405   :  { %v363_v17 = vpop.eup %362 }
 0x406   :  { %v284_v19 = vmul.f32 %v363_v17, %v268_v3 }
 0x408   :  { %v292_v21 = vmul.f32 %v320_v18, %v284_v19 }
 0x409   :  { %v365_v22 = vpop.eup %364 }
 0x40a   :  { %v300_v23 = vadd.f32 %v321_v20, %v292_v21  ;;  %v285_v24 = vmul.f32 %v365_v22, %v269_v7 }
 0x40c   :  { %302 = vst.msk [vmem:[%s490_s9] sm:$0xff] %vm37_vm0, %v300_v23  ;;  %v293_v25 = vmul.f32 %v320_v18, %v285_v24 }
 0x40e   :  { %v301_v26 = vadd.f32 %v321_v20, %v293_v25 }
 0x410   :  { %303 = vst.msk [vmem:[%s490_s9 + $0x8] sm:$0xff] %vm37_vm0, %v301_v26 }

// kernel: music_transformer_forward.11
= control target key start
LH: loop header
LB: loop body
LE: loop exit
PB: predicated region body
PF: predicated region fallthrough
CT: control target
= control target key end

     0   :  { %s1185_s24 = smov 0   ;;  %s1310_s0 = inlined_call_operand.vmem [shape: f32[2,8,32], index: 0, kind: input, shape index: {}]   ;;  %s1311_s1 = inlined_call_operand.vmem [shape: bf16[32,96], index: 1, kind: input, shape index: {}]   ;;  %s1312_s2 = inlined_call_operand.vmem [shape: f32[1,96], index: 2, kind: input, shape index: {}]   ;;  %s1313_s3 = inlined_call_operand.vmem [shape: bf16[32,32], index: 3, kind: input, shape index: {}]   ;;  %s1314_s4 = inlined_call_operand.vmem [shape: f32[1,32], index: 4, kind: input, shape index: {}]   ;;  %s1315_s5 = inlined_call_operand.vmem [shape: f32[1,32], index: 5, kind: input, shape index: {}]   ;;  %s1316_s6 = inlined_call_operand.vmem [shape: f32[1,32], index: 6, kind: input, shape index: {}]   ;;  %s1317_s7 = inlined_call_operand.vmem [shape: f32[2,8,32], index: 7, kind: output, shape index: {}]  }
   0x1 LB: > { %s962_s25 = sadd.s32 4294967295, %s1127_s24   ;;  %p966_p0 = scmp.ge.s32.totalorder %s1127_s24, 1  ;;  %s1127_s24 = sphi %s1185_s24, %s17_s24  }
   0x2   : > { %p236_p1 = scmp.lt.s32.totalorder %s1127_s24, 3 }
   0x4   : > { %p237_p2 = pnand %p966_p0, %p236_p1 }
   0x5   : > { %p266_p3 = scmp.lt.s32.totalorder (!%p237_p2), %s962_s25, 1  ;;  %s1131_s13 = smov (!%p237_p2), 96  }
   0x6   : > { %240 = sbr.rel (%p237_p2) target bundleno = 1732 (0x6c4), region = 48  ;;  %s1132_s14 = smov (!%p237_p2), 120  }
   0x7   : > { %s1133_s15 = smov (!%p237_p2), 88   ;;  %s1134_s16 = smov (!%p237_p2), 80  }
   0x8   : > { %s1135_s17 = smov (!%p237_p2), 112   ;;  %s1136_s18 = smov (!%p237_p2), 72  }
   0x9   : > { %s1137_s19 = smov (!%p237_p2), 104   ;;  %s1138_s20 = smov (!%p237_p2), 56  }
   0xa   : > { %s1139_s21 = smov (!%p237_p2), 64   ;;  %s1140_s22 = smov (!%p237_p2), 40  }
   0xb   : > { %v1099_v0 = vld [vmem:[%s1311_s1 + $0x8] sm:$0xff]   ;;  %v1129_v1 = vmov 0.0   ;;  %v1100_v2 = vld [vmem:[%s1311_s1] sm:$0xff]   ;;  %vm1130_vm0 = vmmov 0   ;;  %s1319_s25 = smov (!%p266_p3, %s962_s25), 1  ;;  %vm300_vm1 = vcmask 261120  }
   0xc   : > { %1011 = vmatprep.subr.bf16.mxu0 %v1129_v1  ;;  %1019 = vmatprep.subr.bf16.mxu1 %v1129_v1  ;;  %s967_s30 = sshll.u32 %s1319_s25, 3  ;;  %v969_v5 = vld [vmem:[%s1312_s2] ss:$0 sm:$0xff]  ;;  %vm353_vm2 = vcmask 64512   ;;  %s1141_s23 = smov 48   ;;  %vm417_vm3 = vcmask 1043456  }
   0xd   : > { %1012 = vmatpush3.bf16.msra.mxu0 %v1099_v0  ;;  %1015 = vmatprep.mubr.msk.bf16.mxu0 %vm1130_vm0, %v1129_v1  ;;  %s269_s10 = scalar_lea.vmem %s1310_s0, %s967_s30  ;;  %s1142_s26 = smov 8   ;;  %vm577_vm4 = vcmask 130112   ;;  %vm693_vm5 = vcmask 195712   ;;  %vm809_vm6 = vcmask 261312  }
   0xe   : > { %1013 = vmatprep.subr.bf16.mxu0 %v1129_v1  ;;  %1021 = vmatprep.mubr.msk.bf16.mxu1 %vm1130_vm0, %v1129_v1  ;;  %v1215_v3 = vld [vmem:[%s269_s10] sm:$0xff]  ;;  %s1143_s9 = smov 16   ;;  %s1144_s10 = smov 24  }
   0xf   : > { %v276_v4 = vpack.c.bf16 %v1215_v3, %v1215_v3 }
  0x11   : > { %1014 = vmatpush3.bf16.msra.mxu0 %v1100_v2 }
  0x12   : > { %1025 = vmatprep.subr.bf16.mxu0 %v1129_v1 }
  0x14   : > { %1016 = vmatmul.mubr.msk.bf16.vlgmr.msra.gmra.mxu0 %vm300_vm1, %v276_v4 }
  0x15   : > { %1027 = vmatprep.mubr.msk.bf16.mxu0 %vm1130_vm0, %v1129_v1 }
  0xd4   : > { %v338_v6 = vpop.f32.mrf.mxu0 }
  0xd5   : > { %v339_v7 = vadd.f32 %v969_v5, %v338_v6 }
  0xd6   : > { %v1017_v8 = vpop.f32.mrf.mxu0 }
  0xd7   : > { %v347_v9 = vmul.f32 0.35355338, %v339_v7  ;;  %v1225_v10 = vpack.c.bf16 %v339_v7, %v339_v7 }
  0xd8   : > { %v341_v11 = vpop.f32.mrf.mxu0 }
  0xd9   : > { %v348_v12 = vpack.c.bf16 %v347_v9, %v347_v9  ;;  %351 = vrot.lane.b32.xlu0 %v1225_v10, %s1131_s13 }
  0xda   : > { %v1018_v13 = vpop.f32.mrf.mxu0 }
  0xdb   : > { %463 = vrot.lane.b32.xlu1 %v348_v12, %s1132_s14 }
  0xdd   : > { %465 = vrot.lane.b32.xlu0 %v1225_v10, %s1133_s15 }
  0xdf   : > { %581 = vrot.lane.b32.xlu1 %v1225_v10, %s1134_s16 }
  0xe1   : > { %579 = vrot.lane.b32.xlu0 %v348_v12, %s1135_s17 }
  0xe3   : > { %697 = vrot.lane.b32.xlu1 %v1225_v10, %s1136_s18 }
  0xe5   : > { %695 = vrot.lane.b32.xlu0 %v348_v12, %s1137_s19  ;;  %s273_s19 = scalar_lea.vmem %s1317_s7, %s967_s30 }
 0x14b   : > { %v352_v14 = vpop.permute.xlu0 %351 }
 0x14c   : > { %v358_v15 = vsel %vm353_vm2, %v352_v14, 0 }
 0x14d   : > { %1020 = vmatpush3.bf16.xpose.msra.mxu1 %v358_v15  ;;  %v464_v17 = vpop.permute.xlu1 %463 }
 0x14e   : > { %1031 = vmatprep.subr.bf16.mxu1 %v1129_v1 }
 0x14f   : > { %v466_v16 = vpop.permute.xlu0 %465 }
 0x150   : > { %v471_v18 = vsel %vm353_vm2, %v466_v16, 0 }
 0x151   : > { %v582_v19 = vpop.permute.xlu1 %581 }
 0x152   : > { %v587_v20 = vsel %vm353_vm2, %v582_v19, 0 }
 0x153   : > { %v580_v22 = vpop.permute.xlu0 %579 }
 0x154   : > { %1022 = vmatmul.mubr.msk.bf16.vlgmr.msra.gmra.mxu1 %vm353_vm2, %v348_v12 }
 0x155   : > { %1032 = vmatpush3.bf16.xpose.msra.mxu1 %v471_v18  ;;  %1033 = vmatprep.mubr.msk.bf16.mxu1 %vm1130_vm0, %v1129_v1  ;;  %v698_v21 = vpop.permute.xlu1 %697 }
 0x156   : > { %1043 = vmatprep.subr.bf16.mxu1 %v1129_v1  ;;  %v703_v23 = vsel %vm353_vm2, %v698_v21, 0 }
 0x157   : > { %v696_v24 = vpop.permute.xlu0 %695 }
 0x15c   : > { %1034 = vmatmul.mubr.msk.bf16.vlgmr.msra.gmra.mxu1 %vm353_vm2, %v464_v17 }
 0x15d   : > { %1044 = vmatpush3.bf16.xpose.msra.mxu1 %v587_v20  ;;  %1045 = vmatprep.mubr.msk.bf16.mxu1 %vm1130_vm0, %v1129_v1 }
 0x15e   : > { %1055 = vmatprep.subr.bf16.mxu1 %v1129_v1 }
 0x164   : > { %1046 = vmatmul.mubr.msk.bf16.vlgmr.msra.gmra.mxu1 %vm353_vm2, %v580_v22 }
 0x165   : > { %1056 = vmatpush3.bf16.xpose.msra.mxu1 %v703_v23  ;;  %1057 = vmatprep.mubr.msk.bf16.mxu1 %vm1130_vm0, %v1129_v1 }
 0x166   : > { %1067 = vmatprep.subr.bf16.mxu1 %v1129_v1 }
 0x16c   : > { %1058 = vmatmul.mubr.msk.bf16.vlgmr.msra.gmra.mxu1 %vm353_vm2, %v696_v24 }
 0x16d   : > { %1071 = vmatprep.mubr.msk.bf16.mxu1 %vm1130_vm0, %v1129_v1 }
 0x214   : > { %v394_v25 = vpop.f32.mrf.mxu1 }
 0x215   : > { %v400_v26 = vsel %vm353_vm2, %v394_v25, -inf }
 0x216   : > { %401 = vmax.xlane.f32.xlu1 %v400_v26  ;;  %v1023_v27 = vpop.f32.mrf.mxu1 }
 0x218   : > { %v397_v28 = vpop.f32.mrf.mxu1 }
 0x21a   : > { %v1024_v29 = vpop.f32.mrf.mxu1 }
 0x21c   : > { %v507_v30 = vpop.f32.mrf.mxu1 }
 0x21d   : > { %v513_v31 = vsel %vm353_vm2, %v507_v30, -inf }
 0x21e   : > { %514 = vmax.xlane.f32.xlu0 %v513_v31  ;;  %v1035_v32 = vpop.f32.mrf.mxu1 }
 0x220   : > { %v510_v33 = vpop.f32.mrf.mxu1 }
 0x222   : > { %v1036_v34 = vpop.f32.mrf.mxu1 }
 0x224   : > { %v623_v35 = vpop.f32.mrf.mxu1 }
 0x225   : > { %v629_v36 = vsel %vm353_vm2, %v623_v35, -inf }
 0x226   : > { %630 = vmax.xlane.f32.xlu0 %v629_v36  ;;  %v1047_v37 = vpop.f32.mrf.mxu1 }
 0x227   : > { %v1102_v37 = vld [vmem:[%s1313_s3] sm:$0xff]  }
 0x228   : > { %v626_v38 = vpop.f32.mrf.mxu1 }
 0x22a   : > { %v1048_v39 = vpop.f32.mrf.mxu1 }
 0x22c   : > { %v739_v40 = vpop.f32.mrf.mxu1 }
 0x22d   : > { %v745_v41 = vsel %vm353_vm2, %v739_v40, -inf }
 0x22e   : > { %746 = vmax.xlane.f32.xlu1 %v745_v41  ;;  %v1059_v42 = vpop.f32.mrf.mxu1 }
 0x230   : > { %v742_v43 = vpop.f32.mrf.mxu1 }
 0x232   : > { %v1060_v44 = vpop.f32.mrf.mxu1 }
 0x29f   : > { %v402_v45 = vpop.xlane.xlu1 %401 }
 0x2a0   : > { %v403_v46 = vsub.f32 %v394_v25, %v402_v45 }
 0x2a2   : > { %v404_v47 = vmul.f32 1.442695, %v403_v46 }
 0x2a4   : > { %1103 = vpow2.f32 %v404_v47 }
 0x2a7   : > { %v515_v48 = vpop.xlane.xlu0 %514 }
 0x2a8   : > { %v516_v49 = vsub.f32 %v507_v30, %v515_v48 }
 0x2aa   : > { %v517_v50 = vmul.f32 1.442695, %v516_v49 }
 0x2ac   : > { %1105 = vpow2.f32 %v517_v50  ;;  %v984_v50 = vld [vmem:[%s1314_s4] ss:$0 sm:$0xff] }
 0x2af   : > { %v631_v51 = vpop.xlane.xlu0 %630 }
 0x2b0   : > { %v632_v52 = vsub.f32 %v623_v35, %v631_v51  ;;  %v1101_v35 = vld [vmem:[%s1313_s3 + $0x8] sm:$0xff]  }
 0x2b1   : > { %v1104_v53 = vpop.eup %1103  ;;  %1068 = vmatpush3.bf16.msra.mxu1 %v1101_v35 }
 0x2b2   : > { %v633_v54 = vmul.f32 1.442695, %v632_v52  ;;  %v406_v55 = vsel %vm353_vm2, %v1104_v53, 0.0  ;;  %1069 = vmatprep.subr.bf16.mxu1 %v1129_v1 }
 0x2b3   : > { %407 = vadd.xlane.f32.xlu0 %v406_v55 }
 0x2b4   : > { %1107 = vpow2.f32 %v633_v54 }
 0x2b5   : > { %1070 = vmatpush3.bf16.msra.mxu1 %v1102_v37 }
 0x2b7   : > { %v747_v60 = vpop.xlane.xlu1 %746 }
 0x2b8   : > { %v748_v61 = vsub.f32 %v739_v40, %v747_v60 }
 0x2b9   : > { %v1106_v56 = vpop.eup %1105 }
 0x2ba   : > { %v519_v57 = vsel %vm353_vm2, %v1106_v56, 0.0  ;;  %v749_v62 = vmul.f32 1.442695, %v748_v61 }
 0x2bb   : > { %520 = vadd.xlane.f32.xlu1 %v519_v57 }
 0x2bc   : > { %1109 = vpow2.f32 %v749_v62 }
 0x2c1   : > { %v1108_v58 = vpop.eup %1107 }
 0x2c2   : > { %v635_v59 = vsel %vm353_vm2, %v1108_v58, 0.0 }
 0x2c3   : > { %636 = vadd.xlane.f32.xlu0 %v635_v59 }
 0x2c9   : > { %v1110_v63 = vpop.eup %1109 }
 0x2ca   : > { %v751_v0 = vsel %vm353_vm2, %v1110_v63, 0.0 }
 0x2cc   : > { %525 = vrot.lane.b32.xlu1 %v1225_v10, %s1138_s20 }
 0x2d9   : > { %412 = vrot.lane.b32.xlu0 %v1225_v10, %s1139_s21 }
 0x2dd   : > { %757 = vrot.lane.b32.xlu0 %v1225_v10, %s1140_s22 }
 0x2f0   : > { %752 = vadd.xlane.f32.xlu1 %v751_v0 }
 0x301   : > { %641 = vrot.lane.b32.xlu1 %v1225_v10, %s1141_s23 }
 0x33c   : > { %v408_v2 = vpop.xlane.xlu0 %407 }
 0x33d   : > { %1111 = vrcp.f32 %v408_v2  ;;  %v985_v2 = vld [vmem:[%s1315_s5] ss:$0 sm:$0xff] }
 0x344   : > { %v521_v4 = vpop.xlane.xlu1 %520 }
 0x345   : > { %1113 = vrcp.f32 %v521_v4 }
 0x348   : > { %v526_v11 = vpop.permute.xlu1 %525 }
 0x349   : > { %v531_v14 = vsel %vm417_vm3, %v526_v11, 0 }
 0x34a   : > { %v1112_v5 = vpop.eup %1111 }
 0x34b   : > { %v410_v7 = vmul.f32 %v1112_v5, %v1104_v53  ;;  %v986_v5 = vld [vmem:[%s1316_s6] ss:$0 sm:$0xff] }
 0x34c   : > { %v637_v6 = vpop.xlane.xlu0 %636 }
 0x34d   : > { %v411_v12 = vpack.c.bf16 %v410_v7, %v410_v7  ;;  %1115 = vrcp.f32 %v637_v6 }
 0x350   : > { %v413_v8 = vpop.permute.xlu0 %412 }
 0x351   : > { %v419_v9 = vsel %vm417_vm3, %v413_v8, 0 }
 0x352   : > { %1026 = vmatpush3.bf16.msra.mxu0 %v419_v9  ;;  %v1114_v13 = vpop.eup %1113 }
 0x353   : > { %1037 = vmatprep.subr.bf16.mxu0 %v1129_v1  ;;  %v523_v10 = vmul.f32 %v1114_v13, %v1106_v56 }
 0x354   : > { %v758_v21 = vpop.permute.xlu0 %757 }
 0x355   : > { %1028 = vmatmul.mubr.msk.bf16.vlgmr.msra.gmra.mxu0 %vm353_vm2, %v411_v12  ;;  %v524_v15 = vpack.c.bf16 %v523_v10, %v523_v10  ;;  %v763_v23 = vsel %vm417_vm3, %v758_v21, 0 }
 0x356   : > { %1038 = vmatpush3.bf16.msra.mxu0 %v531_v14  ;;  %1039 = vmatprep.mubr.msk.bf16.mxu0 %vm1130_vm0, %v1129_v1 }
 0x357   : > { %1049 = vmatprep.subr.bf16.mxu0 %v1129_v1 }
 0x35a   : > { %v1116_v16 = vpop.eup %1115 }
 0x35b   : > { %v639_v18 = vmul.f32 %v1116_v16, %v1108_v58 }
 0x35d   : > { %1040 = vmatmul.mubr.msk.bf16.vlgmr.msra.gmra.mxu0 %vm353_vm2, %v524_v15  ;;  %v640_v22 = vpack.c.bf16 %v639_v18, %v639_v18 }
 0x35e   : > { %1051 = vmatprep.mubr.msk.bf16.mxu0 %vm1130_vm0, %v1129_v1 }
 0x379   : > { %v753_v17 = vpop.xlane.xlu1 %752 }
 0x37a   : > { %1117 = vrcp.f32 %v753_v17 }
 0x37d   : > { %v642_v19 = vpop.permute.xlu1 %641 }
 0x37e   : > { %v647_v20 = vsel %vm417_vm3, %v642_v19, 0 }
 0x37f   : > { %1050 = vmatpush3.bf16.msra.mxu0 %v647_v20 }
 0x380   : > { %1061 = vmatprep.subr.bf16.mxu0 %v1129_v1 }
 0x382   : > { %1052 = vmatmul.mubr.msk.bf16.vlgmr.msra.gmra.mxu0 %vm353_vm2, %v640_v22 }
 0x383   : > { %1062 = vmatpush3.bf16.msra.mxu0 %v763_v23  ;;  %1063 = vmatprep.mubr.msk.bf16.mxu0 %vm1130_vm0, %v1129_v1 }
 0x387   : > { %v1118_v24 = vpop.eup %1117 }
 0x388   : > { %v755_v25 = vmul.f32 %v1118_v24, %v1110_v63 }
 0x38a   : > { %v756_v26 = vpack.c.bf16 %v755_v25, %v755_v25 }
 0x38c   : > { %1064 = vmatmul.mubr.msk.bf16.vlgmr.msra.gmra.mxu0 %vm353_vm2, %v756_v26 }
 0x415   : > { %v455_v27 = vpop.f32.mrf.mxu0 }
 0x416   : > { %461 = vst.msk [vmem:[#allocation2] sm:$0xff] %vm353_vm2, %v455_v27 }
 0x417   : > { %v1029_v28 = vpop.f32.mrf.mxu0 }
 0x419   : > { %v458_v29 = vpop.f32.mrf.mxu0 }
 0x41b   : > { %v1030_v30 = vpop.f32.mrf.mxu0 }
 0x41d   : > { %v567_v31 = vpop.f32.mrf.mxu0 }
 0x41e   : > { %574 = vrot.lane.b32.xlu1 %v567_v31, %s1142_s26 }
 0x41f   : > { %v1041_v32 = vpop.f32.mrf.mxu0 }
 0x421   : > { %v570_v33 = vpop.f32.mrf.mxu0 }
 0x423   : > { %v1042_v34 = vpop.f32.mrf.mxu0 }
 0x442   : > { %v683_v36 = vpop.f32.mrf.mxu0 }
 0x443   : > { %690 = vrot.lane.b32.xlu0 %v683_v36, %s1143_s9 }
 0x444   : > { %v1053_v38 = vpop.f32.mrf.mxu0 }
 0x446   : > { %v686_v39 = vpop.f32.mrf.mxu0 }
 0x448   : > { %v1054_v40 = vpop.f32.mrf.mxu0 }
 0x44c   : > { %v799_v41 = vpop.f32.mrf.mxu0 }
 0x44d   : > { %806 = vrot.lane.b32.xlu1 %v799_v41, %s1144_s10 }
 0x44e   : > { %v1065_v42 = vpop.f32.mrf.mxu0 }
 0x450   : > { %v802_v43 = vpop.f32.mrf.mxu0 }
 0x452   : > { %v1066_v44 = vpop.f32.mrf.mxu0 }
 0x490   : > { %v575_v45 = vpop.permute.xlu1 %574 }
 0x491   : > { %578 = vst.msk [vmem:[#allocation2] sm:$0xff] %vm577_vm4, %v575_v45 }
 0x4b5   : > { %v691_v46 = vpop.permute.xlu0 %690 }
 0x4b6   : > { %694 = vst.msk [vmem:[#allocation2] sm:$0xff] %vm693_vm5, %v691_v46 }
 0x4bf   : > { %v807_v47 = vpop.permute.xlu1 %806 }
 0x4c0   : > { %810 = vst.msk [vmem:[#allocation2] sm:$0xff] %vm809_vm6, %v807_v47 }
 0x4c7   : > { %v811_v1 = vld [vmem:[#allocation2] sm:$0xff] }
 0x4c8   : > { %v812_v48 = vpack.c.bf16 %v811_v1, %v811_v1 }
 0x4ca   : > { %1072 = vmatmul.mubr.msk.bf16.vlgmr.msra.gmra.mxu1 %vm300_vm1, %v812_v48 }
 0x58a   : > { %v866_v49 = vpop.f32.mrf.mxu1 }
 0x58b   : > { %v872_v51 = vadd.f32 %v866_v49, %v1215_v3 }
 0x58c   : > { %v1073_v52 = vpop.f32.mrf.mxu1 }
 0x58d   : > { %v879_v53 = vadd.f32 %v984_v50, %v872_v51 }
 0x58e   : > { %v869_v54 = vpop.f32.mrf.mxu1 }
 0x58f   : > { %v880_v55 = vsel %vm300_vm1, %v879_v53, 0.0 }
 0x590   : > { %881 = vadd.xlane.f32.xlu0 %v880_v55  ;;  %v1074_v56 = vpop.f32.mrf.mxu1 }
 0x619   : > { %v882_v57 = vpop.xlane.xlu0 %881 }
 0x61a   : > { %v884_v58 = vmul.f32 0.03125, %v882_v57 }
 0x61c   : > { %v885_v59 = vsub.f32 %v879_v53, %v884_v58 }
 0x61e   : > { %v886_v60 = vmul.f32 %v885_v59, %v885_v59 }
 0x620   : > { %v887_v61 = vsel %vm300_vm1, %v886_v60, 0.0 }
 0x621   : > { %888 = vadd.xlane.f32.xlu1 %v887_v61 }
 0x6aa   : > { %v889_v62 = vpop.xlane.xlu1 %888 }
 0x6ab   : > { %v890_v63 = vmul.f32 0.03125, %v889_v62 }
 0x6ad   : > { %v891_v0 = vadd.f32 1e-05, %v890_v63 }
 0x6af   : > { %1119 = vrsqrt.f32 %v891_v0 }
 0x6bc   : > { %v1120_v3 = vpop.eup %1119 }
 0x6bd   : > { %v893_v4 = vmul.f32 %v1120_v3, %v885_v59 }
 0x6bf   : > { %v900_v6 = vmul.f32 %v985_v2, %v893_v4 }
 0x6c1   : > { %v907_v7 = vadd.f32 %v986_v5, %v900_v6 }
 0x6c3   : > { %908 = vst.msk [vmem:[%s273_s19] sm:$0xff] %vm300_vm1, %v907_v7 }
 0x6c4 PF: > { %s17_s24 = sadd.s32 1, %s1127_s24  }
 0x6c5   : > { %p14_p4 = scmp.ge.s32.totalorder %s17_s24, 4  }
 0x6c7   :  { %16 = sbr.rel (!%p14_p4) target bundleno = 1 (0x1), region = 78 }

// kernel: music_transformer_forward.16
= control target key start
LH: loop header
LB: loop body
LE: loop exit
PB: predicated region body
PF: predicated region fallthrough
CT: control target
= control target key end

     0   :  { %s1386_s13 = smov 0   ;;  %s1526_s0 = inlined_call_operand.vmem [shape: f32[2,8,32], index: 0, kind: input, shape index: {}]   ;;  %s1527_s1 = inlined_call_operand.vmem [shape: f32[2,8,32], index: 1, kind: input, shape index: {}]   ;;  %s1528_s2 = inlined_call_operand.vmem [shape: bf16[32,32], index: 2, kind: input, shape index: {}]   ;;  %s1529_s3 = inlined_call_operand.vmem [shape: f32[1,32], index: 3, kind: input, shape index: {}]   ;;  %s1530_s4 = inlined_call_operand.vmem [shape: bf16[32,64], index: 4, kind: input, shape index: {}]   ;;  %s1531_s5 = inlined_call_operand.vmem [shape: f32[1,64], index: 5, kind: input, shape index: {}]   ;;  %s1532_s6 = inlined_call_operand.vmem [shape: bf16[32,32], index: 6, kind: input, shape index: {}]   ;;  %s1533_s7 = inlined_call_operand.vmem [shape: f32[1,32], index: 7, kind: input, shape index: {}]   ;;  %s1534_s8 = inlined_call_operand.vmem [shape: f32[1,32], index: 8, kind: input, shape index: {}]   ;;  %s1535_s9 = inlined_call_operand.vmem [shape: f32[1,32], index: 9, kind: input, shape index: {}]   ;;  %s1536_s10 = inlined_call_operand.vmem [shape: f32[2,8,32], index: 10, kind: output, shape index: {}]  }
   0x1 LB: > { %s1138_s14 = sadd.s32 4294967295, %s1317_s13   ;;  %p1142_p0 = scmp.ge.s32.totalorder %s1317_s13, 1  ;;  %s1317_s13 = sphi %s1386_s13, %s20_s13  }
   0x2   : > { %p320_p1 = scmp.lt.s32.totalorder %s1317_s13, 3 }
   0x4   : > { %p321_p2 = pnand %p1142_p0, %p320_p1 }
   0x5   : > { %p360_p3 = scmp.lt.s32.totalorder (!%p321_p2), %s1138_s14, 1  ;;  %s1321_s15 = smov (!%p321_p2), 112  }
   0x6   : > { %324 = sbr.rel (%p321_p2) target bundleno = 1694 (0x69e), region = 60  ;;  %s1322_s16 = smov (!%p321_p2), 120  }
   0x7   : > { %s1323_s17 = smov (!%p321_p2), 104   ;;  %s1324_s18 = smov (!%p321_p2), 96  }
   0x8   : > { %s1325_s19 = smov (!%p321_p2), 80   ;;  %s1326_s20 = smov (!%p321_p2), 72  }
   0x9   : > { %s1327_s21 = smov (!%p321_p2), 88   ;;  %s1328_s22 = smov (!%p321_p2), 8  }
   0xa   : > { %s1329_s28 = smov (!%p321_p2), 16  }
   0xb   : > { %v1287_v0 = vld [vmem:[%s1528_s2 + $0x8] sm:$0xff]   ;;  %v1319_v1 = vmov 0.0   ;;  %v1289_v3 = vld [vmem:[%s1528_s2] sm:$0xff]   ;;  %vm1320_vm0 = vmmov 0   ;;  %s1538_s14 = smov (!%p360_p3, %s1138_s14), 1  ;;  %vm399_vm1 = vcmask 261120  }
   0xc   : > { %1195 = vmatprep.subr.bf16.mxu0 %v1319_v1  ;;  %1203 = vmatprep.subr.bf16.mxu1 %v1319_v1  ;;  %v1288_v2 = vld [vmem:[%s1530_s4 + $0x8] sm:$0xff]   ;;  %v1290_v4 = vld [vmem:[%s1530_s4] sm:$0xff]   ;;  %s1414_s23 = sshll.u32 %s1538_s14, 3  ;;  %vm516_vm2 = vcmask 64512   ;;  %vm581_vm3 = vcmask 1043456   ;;  %vm741_vm4 = vcmask 130112  }
   0xd   : > { %1196 = vmatpush3.bf16.msra.mxu0 %v1287_v0  ;;  %1199 = vmatprep.mubr.msk.bf16.mxu0 %vm1320_vm0, %v1319_v1  ;;  %s363_s26 = scalar_lea.vmem %s1526_s0, %s1414_s23  ;;  %s367_s29 = scalar_lea.vmem %s1527_s1, %s1414_s23  ;;  %v1146_v9 = vld [vmem:[%s1529_s3] ss:$0 sm:$0xff]  ;;  %vm857_vm5 = vcmask 195712   ;;  %vm973_vm6 = vcmask 261312  }
   0xe   : > { %1204 = vmatpush3.bf16.msra.mxu1 %v1288_v2  ;;  %1197 = vmatprep.subr.bf16.mxu0 %v1319_v1  ;;  %v1421_v5 = vld [vmem:[%s363_s26] sm:$0xff] }
   0xf   : > { %1205 = vmatprep.subr.bf16.mxu1 %v1319_v1  ;;  %1207 = vmatprep.mubr.msk.bf16.mxu1 %vm1320_vm0, %v1319_v1  ;;  %v375_v6 = vpack.c.bf16 %v1421_v5, %v1421_v5  ;;  %v374_v7 = vld [vmem:[%s367_s29] sm:$0xff]  ;;  %s1330_s29 = smov 24  }
  0x10   : > { %v443_v8 = vpack.c.bf16 %v374_v7, %v374_v7  ;;  %v1150_v10 = vld [vmem:[%s1531_s5] ss:$0 sm:$0xff] }
  0x11   : > { %1198 = vmatpush3.bf16.msra.mxu0 %v1289_v3 }
  0x12   : > { %1206 = vmatpush3.bf16.msra.mxu1 %v1290_v4  ;;  %1211 = vmatprep.subr.bf16.mxu0 %v1319_v1 }
  0x13   : > { %1217 = vmatprep.subr.bf16.mxu1 %v1319_v1 }
  0x14   : > { %1200 = vmatmul.mubr.msk.bf16.vlgmr.msra.gmra.mxu0 %vm399_vm1, %v375_v6 }
  0x15   : > { %1208 = vmatmul.mubr.msk.bf16.vlgmr.msra.gmra.mxu1 %vm399_vm1, %v443_v8  ;;  %1213 = vmatprep.mubr.msk.bf16.mxu0 %vm1320_vm0, %v1319_v1 }
  0x16   : > { %1219 = vmatprep.mubr.msk.bf16.mxu1 %vm1320_vm0, %v1319_v1 }
  0xd4   : > { %v437_v11 = vpop.f32.mrf.mxu0 }
  0xd5   : > { %v438_v12 = vadd.f32 %v1146_v9, %v437_v11  ;;  %v504_v13 = vpop.f32.mrf.mxu1 }
  0xd6   : > { %v505_v14 = vadd.f32 %v1150_v10, %v504_v13  ;;  %v1201_v15 = vpop.f32.mrf.mxu0 }
  0xd7   : > { %v513_v16 = vmul.f32 0.35355338, %v438_v12  ;;  %v1209_v17 = vpop.f32.mrf.mxu1 }
  0xd8   : > { %v1442_v18 = vpack.c.bf16 %v505_v14, %v505_v14  ;;  %v440_v19 = vpop.f32.mrf.mxu0 }
  0xd9   : > { %v507_v20 = vpop.f32.mrf.mxu1  ;;  %v514_v21 = vpack.c.bf16 %v513_v16, %v513_v16 }
  0xda   : > { %745 = vrot.lane.b32.xlu1 %v1442_v18, %s1321_s15  ;;  %629 = vrot.lane.b32.xlu0 %v1442_v18, %s1322_s16  ;;  %v1202_v22 = vpop.f32.mrf.mxu0  ;;  %v521_v23 = vsel %vm516_vm2, %v1442_v18, 0 }
  0xdb   : > { %v1210_v24 = vpop.f32.mrf.mxu1  ;;  %1212 = vmatpush3.bf16.xpose.msra.mxu0 %v521_v23 }
  0xdc   : > { %1223 = vmatprep.subr.bf16.mxu0 %v1319_v1 }
  0xde   : > { %743 = vrot.lane.b32.xlu1 %v514_v21, %s1321_s15  ;;  %627 = vrot.lane.b32.xlu0 %v514_v21, %s1322_s16 }
  0xe2   : > { %859 = vrot.lane.b32.xlu1 %v514_v21, %s1323_s17  ;;  %861 = vrot.lane.b32.xlu0 %v1442_v18, %s1323_s17 }
  0xe3   : > { %1214 = vmatmul.mubr.msk.bf16.vlgmr.msra.gmra.mxu0 %vm516_vm2, %v514_v21 }
  0xe4   : > { %1225 = vmatprep.mubr.msk.bf16.mxu0 %vm1320_vm0, %v1319_v1 }
 0x14c   : > { %v630_v25 = vpop.permute.xlu0 %629  ;;  %v746_v27 = vpop.permute.xlu1 %745 }
 0x14d   : > { %v635_v26 = vsel %vm516_vm2, %v630_v25, 0  ;;  %v751_v29 = vsel %vm516_vm2, %v746_v27, 0 }
 0x14e   : > { %1224 = vmatpush3.bf16.xpose.msra.mxu0 %v635_v26 }
 0x14f   : > { %1235 = vmatprep.subr.bf16.mxu0 %v1319_v1 }
 0x150   : > { %v628_v28 = vpop.permute.xlu0 %627  ;;  %v744_v31 = vpop.permute.xlu1 %743 }
 0x154   : > { %v862_v30 = vpop.permute.xlu0 %861  ;;  %v860_v33 = vpop.permute.xlu1 %859 }
 0x155   : > { %1226 = vmatmul.mubr.msk.bf16.vlgmr.msra.gmra.mxu0 %vm516_vm2, %v628_v28  ;;  %v867_v32 = vsel %vm516_vm2, %v862_v30, 0 }
 0x156   : > { %1236 = vmatpush3.bf16.xpose.msra.mxu0 %v751_v29  ;;  %1237 = vmatprep.mubr.msk.bf16.mxu0 %vm1320_vm0, %v1319_v1 }
 0x157   : > { %1247 = vmatprep.subr.bf16.mxu0 %v1319_v1 }
 0x15d   : > { %1238 = vmatmul.mubr.msk.bf16.vlgmr.msra.gmra.mxu0 %vm516_vm2, %v744_v31 }
 0x15e   : > { %1248 = vmatpush3.bf16.xpose.msra.mxu0 %v867_v32  ;;  %1249 = vmatprep.mubr.msk.bf16.mxu0 %vm1320_vm0, %v1319_v1 }
 0x15f   : > { %1259 = vmatprep.subr.bf16.mxu0 %v1319_v1 }
 0x165   : > { %1250 = vmatmul.mubr.msk.bf16.vlgmr.msra.gmra.mxu0 %vm516_vm2, %v860_v33 }
 0x166   : > { %1263 = vmatprep.mubr.msk.bf16.mxu0 %vm1320_vm0, %v1319_v1 }
 0x1a3   : > { %v557_v34 = vpop.f32.mrf.mxu0 }
 0x1a4   : > { %v563_v35 = vsel %vm516_vm2, %v557_v34, -inf }
 0x1a5   : > { %564 = vmax.xlane.f32.xlu0 %v563_v35  ;;  %v1215_v36 = vpop.f32.mrf.mxu0 }
 0x1a7   : > { %v560_v37 = vpop.f32.mrf.mxu0 }
 0x1a9   : > { %v1216_v38 = vpop.f32.mrf.mxu0 }
 0x215   : > { %v671_v39 = vpop.f32.mrf.mxu0 }
 0x216   : > { %v677_v40 = vsel %vm516_vm2, %v671_v39, -inf }
 0x217   : > { %678 = vmax.xlane.f32.xlu1 %v677_v40  ;;  %v1227_v41 = vpop.f32.mrf.mxu0 }
 0x219   : > { %v674_v42 = vpop.f32.mrf.mxu0 }
 0x21b   : > { %v1228_v43 = vpop.f32.mrf.mxu0 }
 0x21c   : > { %v1291_v43 = vld [vmem:[%s1532_s6 + $0x8] sm:$0xff]  }
 0x21d   : > { %v787_v44 = vpop.f32.mrf.mxu0  ;;  %1260 = vmatpush3.bf16.msra.mxu0 %v1291_v43 }
 0x21e   : > { %v793_v45 = vsel %vm516_vm2, %v787_v44, -inf  ;;  %1261 = vmatprep.subr.bf16.mxu0 %v1319_v1 }
 0x21f   : > { %794 = vmax.xlane.f32.xlu0 %v793_v45  ;;  %v1239_v46 = vpop.f32.mrf.mxu0  ;;  %v1292_v45 = vld [vmem:[%s1532_s6] sm:$0xff]  }
 0x221   : > { %v790_v47 = vpop.f32.mrf.mxu0  ;;  %1262 = vmatpush3.bf16.msra.mxu0 %v1292_v45 }
 0x223   : > { %v1240_v48 = vpop.f32.mrf.mxu0 }
 0x225   : > { %v903_v49 = vpop.f32.mrf.mxu0 }
 0x226   : > { %v909_v50 = vsel %vm516_vm2, %v903_v49, -inf }
 0x227   : > { %910 = vmax.xlane.f32.xlu0 %v909_v50  ;;  %v1251_v51 = vpop.f32.mrf.mxu0 }
 0x229   : > { %v906_v52 = vpop.f32.mrf.mxu0 }
 0x22b   : > { %v1252_v53 = vpop.f32.mrf.mxu0 }
 0x22e   : > { %v565_v54 = vpop.xlane.xlu0 %564 }
 0x22f   : > { %v566_v55 = vsub.f32 %v557_v34, %v565_v54 }
 0x231   : > { %v567_v56 = vmul.f32 1.442695, %v566_v55 }
 0x233   : > { %1293 = vpow2.f32 %v567_v56 }
 0x240   : > { %v1294_v57 = vpop.eup %1293 }
 0x241   : > { %v569_v58 = vsel %vm516_vm2, %v1294_v57, 0.0 }
 0x242   : > { %570 = vadd.xlane.f32.xlu1 %v569_v58 }
 0x253   : > { %576 = vrot.lane.b32.xlu1 %v1442_v18, %s1324_s18 }
 0x2a0   : > { %v679_v59 = vpop.xlane.xlu1 %678 }
 0x2a1   : > { %v680_v60 = vsub.f32 %v671_v39, %v679_v59  ;;  %v1165_v59 = vld [vmem:[%s1533_s7] ss:$0 sm:$0xff] }
 0x2a3   : > { %v681_v61 = vmul.f32 1.442695, %v680_v60 }
 0x2a5   : > { %1295 = vpow2.f32 %v681_v61 }
 0x2a8   : > { %v795_v62 = vpop.xlane.xlu0 %794 }
 0x2a9   : > { %v796_v63 = vsub.f32 %v787_v44, %v795_v62 }
 0x2ab   : > { %v797_v0 = vmul.f32 1.442695, %v796_v63 }
 0x2ad   : > { %1297 = vpow2.f32 %v797_v0 }
 0x2b0   : > { %v911_v2 = vpop.xlane.xlu0 %910 }
 0x2b1   : > { %v912_v3 = vsub.f32 %v903_v49, %v911_v2 }
 0x2b2   : > { %v1296_v4 = vpop.eup %1295 }
 0x2b3   : > { %v913_v6 = vmul.f32 1.442695, %v912_v3  ;;  %v683_v7 = vsel %vm516_vm2, %v1296_v4, 0.0 }
 0x2b4   : > { %684 = vadd.xlane.f32.xlu0 %v683_v7 }
 0x2b5   : > { %1299 = vpow2.f32 %v913_v6 }
 0x2ba   : > { %v1298_v8 = vpop.eup %1297 }
 0x2bb   : > { %v799_v9 = vsel %vm516_vm2, %v1298_v8, 0.0 }
 0x2bc   : > { %800 = vadd.xlane.f32.xlu1 %v799_v9 }
 0x2c2   : > { %v1300_v10 = vpop.eup %1299 }
 0x2c3   : > { %v915_v11 = vsel %vm516_vm2, %v1300_v10, 0.0 }
 0x2c4   : > { %916 = vadd.xlane.f32.xlu0 %v915_v11 }
 0x2cb   : > { %v571_v12 = vpop.xlane.xlu1 %570 }
 0x2cc   : > { %1301 = vrcp.f32 %v571_v12  ;;  %v1166_v12 = vld [vmem:[%s1534_s8] ss:$0 sm:$0xff] }
 0x2cd   : > { %805 = vrot.lane.b32.xlu1 %v1442_v18, %s1325_s19  ;;  %s371_s19 = scalar_lea.vmem %s1536_s10, %s1414_s23 }
 0x2cf   : > { %v577_v13 = vpop.permute.xlu1 %576 }
 0x2d0   : > { %v583_v14 = vsel %vm581_vm3, %v577_v13, 0 }
 0x2d1   : > { %1218 = vmatpush3.bf16.msra.mxu1 %v583_v14  ;;  %921 = vrot.lane.b32.xlu1 %v1442_v18, %s1326_s20  ;;  %v1167_v14 = vld [vmem:[%s1535_s9] ss:$0 sm:$0xff] }
 0x2d2   : > { %1229 = vmatprep.subr.bf16.mxu1 %v1319_v1 }
 0x2d9   : > { %v1302_v15 = vpop.eup %1301 }
 0x2da   : > { %689 = vrot.lane.b32.xlu0 %v1442_v18, %s1327_s21  ;;  %v573_v16 = vmul.f32 %v1302_v15, %v1294_v57 }
 0x2dc   : > { %v574_v17 = vpack.c.bf16 %v573_v16, %v573_v16 }
 0x2de   : > { %1220 = vmatmul.mubr.msk.bf16.vlgmr.msra.gmra.mxu1 %vm516_vm2, %v574_v17 }
 0x2df   : > { %1231 = vmatprep.mubr.msk.bf16.mxu1 %vm1320_vm0, %v1319_v1 }
 0x33d   : > { %v685_v19 = vpop.xlane.xlu0 %684 }
 0x33e   : > { %1303 = vrcp.f32 %v685_v19 }
 0x345   : > { %v801_v20 = vpop.xlane.xlu1 %800 }
 0x346   : > { %1305 = vrcp.f32 %v801_v20 }
 0x349   : > { %v806_v26 = vpop.permute.xlu1 %805 }
 0x34a   : > { %v811_v28 = vsel %vm581_vm3, %v806_v26, 0 }
 0x34b   : > { %v1304_v21 = vpop.eup %1303 }
 0x34c   : > { %v687_v23 = vmul.f32 %v1304_v21, %v1296_v4 }
 0x34d   : > { %v917_v22 = vpop.xlane.xlu0 %916  ;;  %v922_v30 = vpop.permute.xlu1 %921 }
 0x34e   : > { %1307 = vrcp.f32 %v917_v22  ;;  %v688_v18 = vpack.c.bf16 %v687_v23, %v687_v23  ;;  %v927_v33 = vsel %vm581_vm3, %v922_v30, 0 }
 0x351   : > { %v690_v24 = vpop.permute.xlu0 %689 }
 0x352   : > { %v695_v25 = vsel %vm581_vm3, %v690_v24, 0 }
 0x353   : > { %1230 = vmatpush3.bf16.msra.mxu1 %v695_v25  ;;  %v1306_v27 = vpop.eup %1305 }
 0x354   : > { %1241 = vmatprep.subr.bf16.mxu1 %v1319_v1  ;;  %v803_v29 = vmul.f32 %v1306_v27, %v1298_v8 }
 0x356   : > { %1232 = vmatmul.mubr.msk.bf16.vlgmr.msra.gmra.mxu1 %vm516_vm2, %v688_v18  ;;  %v804_v31 = vpack.c.bf16 %v803_v29, %v803_v29 }
 0x357   : > { %1242 = vmatpush3.bf16.msra.mxu1 %v811_v28  ;;  %1243 = vmatprep.mubr.msk.bf16.mxu1 %vm1320_vm0, %v1319_v1 }
 0x358   : > { %1253 = vmatprep.subr.bf16.mxu1 %v1319_v1 }
 0x35b   : > { %v1308_v32 = vpop.eup %1307 }
 0x35c   : > { %v919_v34 = vmul.f32 %v1308_v32, %v1300_v10 }
 0x35e   : > { %1244 = vmatmul.mubr.msk.bf16.vlgmr.msra.gmra.mxu1 %vm516_vm2, %v804_v31  ;;  %v920_v35 = vpack.c.bf16 %v919_v34, %v919_v34 }
 0x35f   : > { %1254 = vmatpush3.bf16.msra.mxu1 %v927_v33  ;;  %1255 = vmatprep.mubr.msk.bf16.mxu1 %vm1320_vm0, %v1319_v1 }
 0x366   : > { %1256 = vmatmul.mubr.msk.bf16.vlgmr.msra.gmra.mxu1 %vm516_vm2, %v920_v35 }
 0x39e   : > { %v619_v36 = vpop.f32.mrf.mxu1 }
 0x39f   : > { %625 = vst.msk [vmem:[#allocation2] sm:$0xff] %vm516_vm2, %v619_v36 }
 0x3a0   : > { %v1221_v37 = vpop.f32.mrf.mxu1 }
 0x3a2   : > { %v622_v38 = vpop.f32.mrf.mxu1 }
 0x3a4   : > { %v1222_v39 = vpop.f32.mrf.mxu1 }
 0x416   : > { %v731_v40 = vpop.f32.mrf.mxu1 }
 0x417   : > { %738 = vrot.lane.b32.xlu0 %v731_v40, %s1328_s22 }
 0x418   : > { %v1233_v41 = vpop.f32.mrf.mxu1 }
 0x41a   : > { %v734_v42 = vpop.f32.mrf.mxu1 }
 0x41c   : > { %v1234_v44 = vpop.f32.mrf.mxu1 }
 0x41e   : > { %v847_v46 = vpop.f32.mrf.mxu1 }
 0x41f   : > { %854 = vrot.lane.b32.xlu1 %v847_v46, %s1329_s28 }
 0x420   : > { %v1245_v47 = vpop.f32.mrf.mxu1 }
 0x422   : > { %v850_v48 = vpop.f32.mrf.mxu1 }
 0x424   : > { %v1246_v49 = vpop.f32.mrf.mxu1 }
 0x426   : > { %v963_v50 = vpop.f32.mrf.mxu1 }
 0x427   : > { %970 = vrot.lane.b32.xlu0 %v963_v50, %s1330_s29 }
 0x428   : > { %v1257_v51 = vpop.f32.mrf.mxu1 }
 0x42a   : > { %v966_v52 = vpop.f32.mrf.mxu1 }
 0x42c   : > { %v1258_v53 = vpop.f32.mrf.mxu1 }
 0x489   : > { %v739_v54 = vpop.permute.xlu0 %738 }
 0x48a   : > { %742 = vst.msk [vmem:[#allocation2] sm:$0xff] %vm741_vm4, %v739_v54 }
 0x491   : > { %v855_v55 = vpop.permute.xlu1 %854 }
 0x492   : > { %858 = vst.msk [vmem:[#allocation2] sm:$0xff] %vm857_vm5, %v855_v55 }
 0x499   : > { %v971_v1 = vpop.permute.xlu0 %970 }
 0x49a   : > { %974 = vst.msk [vmem:[#allocation2] sm:$0xff] %vm973_vm6, %v971_v1 }
 0x4a1   : > { %v975_v56 = vld [vmem:[#allocation2] sm:$0xff] }
 0x4a2   : > { %v976_v57 = vpack.c.bf16 %v975_v56, %v975_v56 }
 0x4a4   : > { %1264 = vmatmul.mubr.msk.bf16.vlgmr.msra.gmra.mxu0 %vm399_vm1, %v976_v57 }
 0x564   : > { %v1030_v58 = vpop.f32.mrf.mxu0 }
 0x565   : > { %v1036_v60 = vadd.f32 %v1030_v58, %v1421_v5 }
 0x566   : > { %v1265_v61 = vpop.f32.mrf.mxu0 }
 0x567   : > { %v1043_v62 = vadd.f32 %v1165_v59, %v1036_v60 }
 0x568   : > { %v1033_v63 = vpop.f32.mrf.mxu0 }
 0x569   : > { %v1044_v0 = vsel %vm399_vm1, %v1043_v62, 0.0 }
 0x56a   : > { %1045 = vadd.xlane.f32.xlu1 %v1044_v0  ;;  %v1266_v2 = vpop.f32.mrf.mxu0 }
 0x5f3   : > { %v1046_v3 = vpop.xlane.xlu1 %1045 }
 0x5f4   : > { %v1048_v4 = vmul.f32 0.03125, %v1046_v3 }
 0x5f6   : > { %v1049_v6 = vsub.f32 %v1043_v62, %v1048_v4 }
 0x5f8   : > { %v1050_v7 = vmul.f32 %v1049_v6, %v1049_v6 }
 0x5fa   : > { %v1051_v8 = vsel %vm399_vm1, %v1050_v7, 0.0 }
 0x5fb   : > { %1052 = vadd.xlane.f32.xlu0 %v1051_v8 }
 0x684   : > { %v1053_v9 = vpop.xlane.xlu0 %1052 }
 0x685   : > { %v1054_v10 = vmul.f32 0.03125, %v1053_v9 }
 0x687   : > { %v1055_v11 = vadd.f32 1e-05, %v1054_v10 }
 0x689   : > { %1309 = vrsqrt.f32 %v1055_v11 }
 0x696   : > { %v1310_v5 = vpop.eup %1309 }
 0x697   : > { %v1057_v13 = vmul.f32 %v1310_v5, %v1049_v6 }
 0x699   : > { %v1064_v15 = vmul.f32 %v1166_v12, %v1057_v13 }
 0x69b   : > { %v1071_v16 = vadd.f32 %v1167_v14, %v1064_v15 }
 0x69d   : > { %1072 = vst.msk [vmem:[%s371_s19] sm:$0xff] %vm399_vm1, %v1071_v16 }
 0x69e PF: > { %s20_s13 = sadd.s32 1, %s1317_s13  }
 0x69f   : > { %p17_p4 = scmp.ge.s32.totalorder %s20_s13, 4  }
 0x6a1   :  { %19 = sbr.rel (!%p17_p4) target bundleno = 1 (0x1), region = 93 }

// kernel: music_transformer_forward.21
= control target key start
LH: loop header
LB: loop body
LE: loop exit
PB: predicated region body
PF: predicated region fallthrough
CT: control target
= control target key end

     0   :  { %v136_v0 = vmov 0.0   ;;  %vm137_vm0 = vmmov 0   ;;  %vm46_vm1 = vcmask 261120   ;;  %s176_s1 = inlined_call_operand.vmem [shape: bf16[32,128], index: 1, kind: input, shape index: {}]   ;;  %s177_s0 = inlined_call_operand.vmem [shape: bf16[16,32], index: 0, kind: input, shape index: {}]   ;;  %s178_s2 = inlined_call_operand.vmem [shape: f32[1,128], index: 2, kind: input, shape index: {}]   ;;  %s179_s3 = inlined_call_operand.vmem [shape: f32[16,128], index: 3, kind: output, shape index: {}]  }
   0x1   :  { %123 = vmatprep.subr.bf16.mxu0 %v136_v0  ;;  %v133_v1 = vld [vmem:[%s176_s1 + $0x8] sm:$0xff]   ;;  %127 = vmatprep.mubr.msk.bf16.mxu0 %vm137_vm0, %v136_v0  ;;  %v134_v2 = vld [vmem:[%s176_s1] sm:$0xff]  }
   0x2   :  { %124 = vmatpush3.bf16.msra.mxu0 %v133_v1  ;;  %v135_v3 = vld [vmem:[%s177_s0] sm:$0xff]  }
   0x3   :  { %125 = vmatprep.subr.bf16.mxu0 %v136_v0  ;;  %v119_v4 = vld [vmem:[%s178_s2] ss:$0 sm:$0xff] }
   0x6   :  { %126 = vmatpush3.bf16.msra.mxu0 %v134_v2 }
   0x9   :  { %128 = vmatmul.mubr.msk.bf16.vlgmr.msra.gmra.mxu0 %vm46_vm1, %v135_v3 }
  0xc9   :  { %v84_v5 = vpop.f32.mrf.mxu0 }
  0xca   :  { %v107_v6 = vadd.f32 %v119_v4, %v84_v5 }
  0xcb   :  { %v129_v7 = vpop.f32.mrf.mxu0 }
  0xcc   :  { %109 = vst [vmem:[%s179_s3] sm:$0xff] %v107_v6 }
  0xcd   :  { %v87_v8 = vpop.f32.mrf.mxu0 }
  0xce   :  { %v108_v9 = vadd.f32 %v119_v4, %v87_v8 }
  0xcf   :  { %v130_v10 = vpop.f32.mrf.mxu0 }
  0xd0   :  { %110 = vst [vmem:[%s179_s3 + $0x8] sm:$0xff] %v108_v9 }

</bundles_post_ra>
